<compile_context>
chip_gen: v7x
topology: tpu7x:2x2x1
jax: 0.10.0
libtpu: 0.0.40
codegen_flags: <defaults>
</compile_context>

<pallas_src>
import functools

import jax
import jax.numpy as jnp
from jax.experimental import pallas as pl
from jax.experimental.pallas import tpu as pltpu


# ----------------------------------------------------------------------------
# Fused kernel.
# Inputs (VMEM, full-array blocks):
#   x_ref                 : (T*Bp, Din)       bf16  time-major, batch-padded, flattened
#   wih_l (one per layer) : (Din_l, 4H)       bf16
#   whh_ref               : (L, H, 4H)        bf16  packed recurrent weights
#   bias_ref              : (L, 4H)           f32   combined b_ih + b_hh per layer
#   attr_ref              : (Bp, A)           f32
#   wa1_ref (A, F) bf16, wa2_ref (F, F) bf16, ba_ref (2, F) f32
#   wf_ref  (H+F, O) bf16, bf_ref (1, O) f32
# Output:
#   out_ref               : (Bp, O)           f32
# Gate order matches PyTorch nn.LSTM: [i, f, g, o].
# ----------------------------------------------------------------------------
def fused_kernel(x_ref, *refs, num_layers, seq_len, batch, hidden):
    L, T, B, H = num_layers, seq_len, batch, hidden
    wih_refs = refs[:L]
    (whh_ref, bias_ref, attr_ref, wa1_ref, wa2_ref,
     ba_ref, wf_ref, bf_ref, out_ref) = refs[L:]

    # Hoisted lane constants: g-gate lanes are [2H, 3H).
    lane = jax.lax.broadcasted_iota(jnp.int32, (B, 4 * H), 1)
    is_g = jnp.logical_and(lane >= 2 * H, lane < 3 * H)
    pre_scale = jnp.where(is_g, 2.0, 1.0).astype(jnp.float32)    # x -> 2x on g lanes
    post_scale = jnp.where(is_g, 2.0, 1.0).astype(jnp.float32)   # s -> 2s - 1 on g lanes
    post_shift = jnp.where(is_g, -1.0, 0.0).astype(jnp.float32)

    bias_all = bias_ref[...]                                     # (L, 4H) f32
    whh = [whh_ref[l] for l in range(L)]                         # each (H, 4H) bf16
    wih = [wih_refs[l][...] for l in range(L)]                   # (Din_l, 4H) bf16

    # Layer-0 input projection hoisted over the whole sequence (bias folded in):
    # one MXU call; the serial recurrence only does the tiny h @ Whh matmuls.
    gx0 = jnp.dot(x_ref[...], wih[0],
                  preferred_element_type=jnp.float32) + bias_all[0:1, :]   # (T*B, 4H)

    def lstm_step(l, gates, h_prev, c_prev):
        gates = gates + jnp.dot(h_prev.astype(jnp.bfloat16), whh[l],
                                preferred_element_type=jnp.float32)
        # Single full-vreg EUP pass: sigmoid on i/f/o lanes, tanh on g lanes via
        # tanh(x) = 2*sigmoid(2x) - 1; only cheap VPU ops around it.
        s = jax.nn.sigmoid(gates * pre_scale)
        act = s * post_scale + post_shift
        i_g = act[:, 0:H]
        f_g = act[:, H:2 * H]
        g_g = act[:, 2 * H:3 * H]
        o_g = act[:, 3 * H:4 * H]
        # NOTE: the 32-lane gate extracts are XLU lane shifts; if bundle dumps show
        # them on the critical chain, switch to a gate-major (4B, H) layout.
        c_new = f_g * c_prev + i_g * g_g
        h_new = o_g * jnp.tanh(c_new)
        return h_new, c_new

    h = [jnp.zeros((B, H), jnp.float32) for _ in range(L)]
    c = [jnp.zeros((B, H), jnp.float32) for _ in range(L)]
    feed = [None] * L   # feed[l]: layer l's most recent output (bf16), read by layer l+1

    # Wavefront schedule over the (layer, time) grid: diagonal d covers (l, t=d-l).
    # Serial depth drops from L*T to T+L-1 and the per-layer MXU pushes / gate passes
    # of the same diagonal overlap. Deepest layer first within a diagonal so
    # feed[l-1] still holds the previous diagonal's value when it is read.
    for d in range(T + L - 1):
        for l in range(L - 1, -1, -1):
            t = d - l
            if not (0 <= t < T):
                continue
            if l == 0:
                gates_in = gx0[t * B:(t + 1) * B, :]
            else:
                gates_in = jnp.dot(feed[l - 1], wih[l],
                                   preferred_element_type=jnp.float32) + bias_all[l:l + 1, :]
            h[l], c[l] = lstm_step(l, gates_in, h[l], c[l])
            feed[l] = h[l].astype(jnp.bfloat16)

    # ---- fused head: attribute MLP + final linear (epilogue, off the serial chain) ----
    ba = ba_ref[...]                                              # (2, F) f32
    a1 = jnp.maximum(
        jnp.dot(attr_ref[...].astype(jnp.bfloat16), wa1_ref[...],
                preferred_element_type=jnp.float32) + ba[0:1, :], 0.0)
    a2 = jnp.maximum(
        jnp.dot(a1.astype(jnp.bfloat16), wa2_ref[...],
                preferred_element_type=jnp.float32) + ba[1:2, :], 0.0)
    combined = jnp.concatenate([h[L - 1], a2], axis=1).astype(jnp.bfloat16)   # (B, H+F)
    out_ref[...] = (jnp.dot(combined, wf_ref[...],
                            preferred_element_type=jnp.float32) + bf_ref[...])


# ----------------------------------------------------------------------------
# Parameter construction (deterministic, PyTorch-shaped, then pre-transposed, f32).
# ----------------------------------------------------------------------------
def init_params(key, input_dim, hidden_size, num_layers, attr_dim, fc_dim, output_dim):
    params = {}
    scale = 1.0 / jnp.sqrt(hidden_size)

    lstm_layers = []
    for layer in range(num_layers):
        din = input_dim if layer == 0 else hidden_size
        key, k1, k2, k3, k4 = jax.random.split(key, 5)
        w_ih = jax.random.uniform(k1, (4 * hidden_size, din), jnp.float32, -scale, scale)
        w_hh = jax.random.uniform(k2, (4 * hidden_size, hidden_size), jnp.float32, -scale, scale)
        b_ih = jax.random.uniform(k3, (4 * hidden_size,), jnp.float32, -scale, scale)
        b_hh = jax.random.uniform(k4, (4 * hidden_size,), jnp.float32, -scale, scale)
        lstm_layers.append({
            "w_ih_t": w_ih.T,          # (Din, 4H)
            "w_hh_t": w_hh.T,          # (H, 4H)
            "bias": b_ih + b_hh,       # (4H,)  nn.LSTM adds both biases
        })
    params["lstm"] = lstm_layers

    def linear(key, fan_in, fan_out):
        k1, k2 = jax.random.split(key)
        bound = 1.0 / jnp.sqrt(fan_in)
        w = jax.random.uniform(k1, (fan_out, fan_in), jnp.float32, -bound, bound)
        b = jax.random.uniform(k2, (fan_out,), jnp.float32, -bound, bound)
        return w, b

    key, ka1, ka2, kf = jax.random.split(key, 4)
    wa1, ba1 = linear(ka1, attr_dim, fc_dim)
    wa2, ba2 = linear(ka2, fc_dim, fc_dim)
    wf, bf = linear(kf, hidden_size + fc_dim, output_dim)

    params["wa1_t"] = wa1.T                       # (A, F)
    params["wa2_t"] = wa2.T                       # (F, F)
    params["ba_pack"] = jnp.stack([ba1, ba2])     # (2, F)
    params["wf_t"] = wf.T                         # (H+F, O): rows [0:H]=ts_feat, [H:]=attr_feat
    params["bf"] = bf.reshape(1, output_dim)      # (1, O)
    return params


# ----------------------------------------------------------------------------
# Forward pass matching MultiBranchLSTM.forward (use_attr=True, dropout=0).
# ----------------------------------------------------------------------------
def multi_branch_lstm_forward(params, x_ts, x_attr, hidden_size, output_dim):
    """x_ts: (B, T, D) f32, x_attr: (B, A) f32 -> (B,) f32 (output_dim=1 squeezed)."""
    B, T, Din = x_ts.shape
    H = hidden_size
    lstm = params["lstm"]
    L = len(lstm)
    Bp = ((B + 7) // 8) * 8                       # pad batch to sublane width

    # Tiny XLA glue (fused under jit): time-major + batch pad + flatten + bf16 cast.
    # At production scale this relayout would be absorbed by a batch grid instead.
    x = jnp.transpose(x_ts.astype(jnp.float32), (1, 0, 2))        # (T, B, Din)
    x = jnp.pad(x, ((0, 0), (0, Bp - B), (0, 0)))                 # (T, Bp, Din)
    x = x.reshape(T * Bp, Din).astype(jnp.bfloat16)

    attr = jnp.pad(x_attr.astype(jnp.float32), ((0, Bp - B), (0, 0)))   # (Bp, A)

    wih_args = [lstm[l]["w_ih_t"].astype(jnp.bfloat16) for l in range(L)]
    whh_pack = jnp.stack([lstm[l]["w_hh_t"] for l in range(L)]).astype(jnp.bfloat16)  # (L,H,4H)
    bias_pack = jnp.stack([lstm[l]["bias"] for l in range(L)]).astype(jnp.float32)    # (L,4H)

    args = [x, *wih_args, whh_pack, bias_pack,
            attr,
            params["wa1_t"].astype(jnp.bfloat16),
            params["wa2_t"].astype(jnp.bfloat16),
            params["ba_pack"].astype(jnp.float32),
            params["wf_t"].astype(jnp.bfloat16),
            params["bf"].astype(jnp.float32)]

    vmem = pl.BlockSpec(memory_space=pltpu.MemorySpace.VMEM)

    out = pl.pallas_call(
        functools.partial(fused_kernel, num_layers=L, seq_len=T, batch=Bp, hidden=H),
        out_shape=jax.ShapeDtypeStruct((Bp, output_dim), jnp.float32),
        in_specs=[vmem] * len(args),
        out_specs=vmem,
    )(*args)

    return jnp.squeeze(out[:B], axis=-1)          # matches out.squeeze(-1)


if __name__ == "__main__":
    # Small shapes consistent with the module's forward signature.
    batch, seq_len, input_dim = 2, 8, 4
    hidden_size, num_layers = 32, 2
    attr_dim, fc_dim, output_dim = 6, 16, 1

    key = jax.random.PRNGKey(0)
    kp, kx, ka = jax.random.split(key, 3)

    params = init_params(kp, input_dim, hidden_size, num_layers, attr_dim, fc_dim, output_dim)
    x_ts = jax.random.normal(kx, (batch, seq_len, input_dim), jnp.float32)
    x_attr = jax.random.normal(ka, (batch, attr_dim), jnp.float32)

    fwd = jax.jit(multi_branch_lstm_forward, static_argnums=(3, 4))
    out = fwd(params, x_ts, x_attr, hidden_size, output_dim)
    out = jax.block_until_ready(out)
    assert out.shape == (batch,), out.shape
    print("KERNEL_OK")
</pallas_src>

<mosaic_0001>
module attributes {stable_mosaic.version = 11 : i64} {
  func.func @fused_kernel(%arg0: memref<64x4xbf16, #tpu.memory_space<vmem>>, %arg1: memref<4x128xbf16, #tpu.memory_space<vmem>>, %arg2: memref<32x128xbf16, #tpu.memory_space<vmem>>, %arg3: memref<2x32x128xbf16, #tpu.memory_space<vmem>>, %arg4: memref<2x128xf32, #tpu.memory_space<vmem>>, %arg5: memref<8x6xf32, #tpu.memory_space<vmem>>, %arg6: memref<6x16xbf16, #tpu.memory_space<vmem>>, %arg7: memref<16x16xbf16, #tpu.memory_space<vmem>>, %arg8: memref<2x16xf32, #tpu.memory_space<vmem>>, %arg9: memref<48x1xbf16, #tpu.memory_space<vmem>>, %arg10: memref<1x1xf32, #tpu.memory_space<vmem>>, %arg11: memref<8x1xf32, #tpu.memory_space<vmem>>) attributes {dimension_semantics = [], scalar_prefetch = 0 : i64, scratch_operands = 0 : i64, tpu.core_type = #tpu.core_type<tc>} {
    %0 = tpu.iota {dimensions = array<i32: 1>} : vector<8x128xi32>
    %c64_i32 = arith.constant 64 : i32
    %1 = vector.broadcast %c64_i32 : i32 to vector<8x128xi32>
    %2 = arith.cmpi sge, %0, %1 : vector<8x128xi32>
    %c96_i32 = arith.constant 96 : i32
    %3 = vector.broadcast %c96_i32 : i32 to vector<8x128xi32>
    %4 = arith.cmpi slt, %0, %3 : vector<8x128xi32>
    %5 = arith.andi %2, %4 : vector<8x128xi1>
    %cst = arith.constant 2.000000e+00 : f32
    %cst_0 = arith.constant 1.000000e+00 : f32
    %6 = vector.broadcast %cst : f32 to vector<8x128xf32>
    %7 = vector.broadcast %cst_0 : f32 to vector<8x128xf32>
    %8 = arith.select %5, %6, %7 : vector<8x128xi1>, vector<8x128xf32>
    %cst_1 = arith.constant 2.000000e+00 : f32
    %cst_2 = arith.constant 1.000000e+00 : f32
    %9 = vector.broadcast %cst_1 : f32 to vector<8x128xf32>
    %10 = vector.broadcast %cst_2 : f32 to vector<8x128xf32>
    %11 = arith.select %5, %9, %10 : vector<8x128xi1>, vector<8x128xf32>
    %cst_3 = arith.constant -1.000000e+00 : f32
    %cst_4 = arith.constant 0.000000e+00 : f32
    %12 = vector.broadcast %cst_3 : f32 to vector<8x128xf32>
    %13 = vector.broadcast %cst_4 : f32 to vector<8x128xf32>
    %14 = arith.select %5, %12, %13 : vector<8x128xi1>, vector<8x128xf32>
    %c0 = arith.constant 0 : index
    %c0_5 = arith.constant 0 : index
    %15 = vector.load %arg4[%c0, %c0_5] : memref<2x128xf32, #tpu.memory_space<vmem>>, vector<2x128xf32>
    %c0_6 = arith.constant 0 : index
    %c0_7 = arith.constant 0 : index
    %c0_8 = arith.constant 0 : index
    %16 = vector.load %arg3[%c0_6, %c0_7, %c0_8] : memref<2x32x128xbf16, #tpu.memory_space<vmem>>, vector<1x32x128xbf16>
    %17 = vector.shape_cast %16 : vector<1x32x128xbf16> to vector<32x128xbf16>
    %c1 = arith.constant 1 : index
    %c0_9 = arith.constant 0 : index
    %c0_10 = arith.constant 0 : index
    %18 = vector.load %arg3[%c1, %c0_9, %c0_10] : memref<2x32x128xbf16, #tpu.memory_space<vmem>>, vector<1x32x128xbf16>
    %19 = vector.shape_cast %18 : vector<1x32x128xbf16> to vector<32x128xbf16>
    %c0_11 = arith.constant 0 : index
    %c0_12 = arith.constant 0 : index
    %20 = vector.load %arg1[%c0_11, %c0_12] : memref<4x128xbf16, #tpu.memory_space<vmem>>, vector<4x128xbf16>
    %c0_13 = arith.constant 0 : index
    %c0_14 = arith.constant 0 : index
    %21 = vector.load %arg2[%c0_13, %c0_14] : memref<32x128xbf16, #tpu.memory_space<vmem>>, vector<32x128xbf16>
    %c0_15 = arith.constant 0 : index
    %c0_16 = arith.constant 0 : index
    %22 = vector.load %arg0[%c0_15, %c0_16] : memref<64x4xbf16, #tpu.memory_space<vmem>>, vector<64x4xbf16>
    %cst_17 = arith.constant dense<0.000000e+00> : vector<64x128xf32>
    %23 = tpu.matmul %22, %20, %cst_17 {dimension_numbers = #tpu.dot_dimension_numbers<[1], [0], [0], [1], [0, 0, 1, 1], [], []>} : vector<64x4xbf16>, vector<4x128xbf16>, vector<64x128xf32> -> vector<64x128xf32>
    %24 = vector.extract_strided_slice %15 {offsets = [0, 0], sizes = [1, 128], strides = [1, 1]} : vector<2x128xf32> to vector<1x128xf32>
    %25 = vector.broadcast %24 : vector<1x128xf32> to vector<64x128xf32>
    %26 = arith.addf %23, %25 : vector<64x128xf32>
    %cst_18 = arith.constant 0.000000e+00 : f32
    %27 = vector.broadcast %cst_18 : f32 to vector<8x32xf32>
    %cst_19 = arith.constant 0.000000e+00 : f32
    %28 = vector.broadcast %cst_19 : f32 to vector<8x32xf32>
    %cst_20 = arith.constant 0.000000e+00 : f32
    %29 = vector.broadcast %cst_20 : f32 to vector<8x32xf32>
    %cst_21 = arith.constant 0.000000e+00 : f32
    %30 = vector.broadcast %cst_21 : f32 to vector<8x32xf32>
    %31 = vector.extract_strided_slice %26 {offsets = [0, 0], sizes = [8, 128], strides = [1, 1]} : vector<64x128xf32> to vector<8x128xf32>
    %32 = arith.truncf %27 : vector<8x32xf32> to vector<8x32xbf16>
    %cst_22 = arith.constant dense<0.000000e+00> : vector<8x128xf32>
    %33 = tpu.matmul %32, %17, %cst_22 {dimension_numbers = #tpu.dot_dimension_numbers<[1], [0], [0], [1], [0, 0, 1, 1], [], []>} : vector<8x32xbf16>, vector<32x128xbf16>, vector<8x128xf32> -> vector<8x128xf32>
    %34 = arith.addf %31, %33 : vector<8x128xf32>
    %35 = arith.mulf %34, %8 : vector<8x128xf32>
    %36 = arith.negf %35 : vector<8x128xf32>
    %37 = math.exp %36 : vector<8x128xf32>
    %cst_23 = arith.constant 1.000000e+00 : f32
    %38 = vector.broadcast %cst_23 : f32 to vector<8x128xf32>
    %39 = arith.addf %38, %37 : vector<8x128xf32>
    %40 = arith.divf %38, %39 : vector<8x128xf32>
    %41 = arith.mulf %40, %11 : vector<8x128xf32>
    %42 = arith.addf %41, %14 : vector<8x128xf32>
    %43 = vector.extract_strided_slice %42 {offsets = [0, 0], sizes = [8, 32], strides = [1, 1]} : vector<8x128xf32> to vector<8x32xf32>
    %44 = vector.extract_strided_slice %42 {offsets = [0, 32], sizes = [8, 32], strides = [1, 1]} : vector<8x128xf32> to vector<8x32xf32>
    %45 = vector.extract_strided_slice %42 {offsets = [0, 64], sizes = [8, 32], strides = [1, 1]} : vector<8x128xf32> to vector<8x32xf32>
    %46 = vector.extract_strided_slice %42 {offsets = [0, 96], sizes = [8, 32], strides = [1, 1]} : vector<8x128xf32> to vector<8x32xf32>
    %47 = arith.mulf %44, %29 : vector<8x32xf32>
    %48 = arith.mulf %43, %45 : vector<8x32xf32>
    %49 = arith.addf %47, %48 : vector<8x32xf32>
    %50 = math.tanh %49 : vector<8x32xf32>
    %51 = arith.mulf %46, %50 : vector<8x32xf32>
    %52 = arith.truncf %51 : vector<8x32xf32> to vector<8x32xbf16>
    %cst_24 = arith.constant dense<0.000000e+00> : vector<8x128xf32>
    %53 = tpu.matmul %52, %21, %cst_24 {dimension_numbers = #tpu.dot_dimension_numbers<[1], [0], [0], [1], [0, 0, 1, 1], [], []>} : vector<8x32xbf16>, vector<32x128xbf16>, vector<8x128xf32> -> vector<8x128xf32>
    %54 = vector.extract_strided_slice %15 {offsets = [1, 0], sizes = [1, 128], strides = [1, 1]} : vector<2x128xf32> to vector<1x128xf32>
    %55 = vector.broadcast %54 : vector<1x128xf32> to vector<8x128xf32>
    %56 = arith.addf %53, %55 : vector<8x128xf32>
    %57 = arith.truncf %28 : vector<8x32xf32> to vector<8x32xbf16>
    %cst_25 = arith.constant dense<0.000000e+00> : vector<8x128xf32>
    %58 = tpu.matmul %57, %19, %cst_25 {dimension_numbers = #tpu.dot_dimension_numbers<[1], [0], [0], [1], [0, 0, 1, 1], [], []>} : vector<8x32xbf16>, vector<32x128xbf16>, vector<8x128xf32> -> vector<8x128xf32>
    %59 = arith.addf %56, %58 : vector<8x128xf32>
    %60 = arith.mulf %59, %8 : vector<8x128xf32>
    %61 = arith.negf %60 : vector<8x128xf32>
    %62 = math.exp %61 : vector<8x128xf32>
    %cst_26 = arith.constant 1.000000e+00 : f32
    %63 = vector.broadcast %cst_26 : f32 to vector<8x128xf32>
    %64 = arith.addf %63, %62 : vector<8x128xf32>
    %65 = arith.divf %63, %64 : vector<8x128xf32>
    %66 = arith.mulf %65, %11 : vector<8x128xf32>
    %67 = arith.addf %66, %14 : vector<8x128xf32>
    %68 = vector.extract_strided_slice %67 {offsets = [0, 0], sizes = [8, 32], strides = [1, 1]} : vector<8x128xf32> to vector<8x32xf32>
    %69 = vector.extract_strided_slice %67 {offsets = [0, 32], sizes = [8, 32], strides = [1, 1]} : vector<8x128xf32> to vector<8x32xf32>
    %70 = vector.extract_strided_slice %67 {offsets = [0, 64], sizes = [8, 32], strides = [1, 1]} : vector<8x128xf32> to vector<8x32xf32>
    %71 = vector.extract_strided_slice %67 {offsets = [0, 96], sizes = [8, 32], strides = [1, 1]} : vector<8x128xf32> to vector<8x32xf32>
    %72 = arith.mulf %69, %30 : vector<8x32xf32>
    %73 = arith.mulf %68, %70 : vector<8x32xf32>
    %74 = arith.addf %72, %73 : vector<8x32xf32>
    %75 = math.tanh %74 : vector<8x32xf32>
    %76 = arith.mulf %71, %75 : vector<8x32xf32>
    %77 = vector.extract_strided_slice %26 {offsets = [8, 0], sizes = [8, 128], strides = [1, 1]} : vector<64x128xf32> to vector<8x128xf32>
    %78 = arith.truncf %51 : vector<8x32xf32> to vector<8x32xbf16>
    %cst_27 = arith.constant dense<0.000000e+00> : vector<8x128xf32>
    %79 = tpu.matmul %78, %17, %cst_27 {dimension_numbers = #tpu.dot_dimension_numbers<[1], [0], [0], [1], [0, 0, 1, 1], [], []>} : vector<8x32xbf16>, vector<32x128xbf16>, vector<8x128xf32> -> vector<8x128xf32>
    %80 = arith.addf %77, %79 : vector<8x128xf32>
    %81 = arith.mulf %80, %8 : vector<8x128xf32>
    %82 = arith.negf %81 : vector<8x128xf32>
    %83 = math.exp %82 : vector<8x128xf32>
    %cst_28 = arith.constant 1.000000e+00 : f32
    %84 = vector.broadcast %cst_28 : f32 to vector<8x128xf32>
    %85 = arith.addf %84, %83 : vector<8x128xf32>
    %86 = arith.divf %84, %85 : vector<8x128xf32>
    %87 = arith.mulf %86, %11 : vector<8x128xf32>
    %88 = arith.addf %87, %14 : vector<8x128xf32>
    %89 = vector.extract_strided_slice %88 {offsets = [0, 0], sizes = [8, 32], strides = [1, 1]} : vector<8x128xf32> to vector<8x32xf32>
    %90 = vector.extract_strided_slice %88 {offsets = [0, 32], sizes = [8, 32], strides = [1, 1]} : vector<8x128xf32> to vector<8x32xf32>
    %91 = vector.extract_strided_slice %88 {offsets = [0, 64], sizes = [8, 32], strides = [1, 1]} : vector<8x128xf32> to vector<8x32xf32>
    %92 = vector.extract_strided_slice %88 {offsets = [0, 96], sizes = [8, 32], strides = [1, 1]} : vector<8x128xf32> to vector<8x32xf32>
    %93 = arith.mulf %90, %49 : vector<8x32xf32>
    %94 = arith.mulf %89, %91 : vector<8x32xf32>
    %95 = arith.addf %93, %94 : vector<8x32xf32>
    %96 = math.tanh %95 : vector<8x32xf32>
    %97 = arith.mulf %92, %96 : vector<8x32xf32>
    %98 = arith.truncf %97 : vector<8x32xf32> to vector<8x32xbf16>
    %cst_29 = arith.constant dense<0.000000e+00> : vector<8x128xf32>
    %99 = tpu.matmul %98, %21, %cst_29 {dimension_numbers = #tpu.dot_dimension_numbers<[1], [0], [0], [1], [0, 0, 1, 1], [], []>} : vector<8x32xbf16>, vector<32x128xbf16>, vector<8x128xf32> -> vector<8x128xf32>
    %100 = vector.extract_strided_slice %15 {offsets = [1, 0], sizes = [1, 128], strides = [1, 1]} : vector<2x128xf32> to vector<1x128xf32>
    %101 = vector.broadcast %100 : vector<1x128xf32> to vector<8x128xf32>
    %102 = arith.addf %99, %101 : vector<8x128xf32>
    %103 = arith.truncf %76 : vector<8x32xf32> to vector<8x32xbf16>
    %cst_30 = arith.constant dense<0.000000e+00> : vector<8x128xf32>
    %104 = tpu.matmul %103, %19, %cst_30 {dimension_numbers = #tpu.dot_dimension_numbers<[1], [0], [0], [1], [0, 0, 1, 1], [], []>} : vector<8x32xbf16>, vector<32x128xbf16>, vector<8x128xf32> -> vector<8x128xf32>
    %105 = arith.addf %102, %104 : vector<8x128xf32>
    %106 = arith.mulf %105, %8 : vector<8x128xf32>
    %107 = arith.negf %106 : vector<8x128xf32>
    %108 = math.exp %107 : vector<8x128xf32>
    %cst_31 = arith.constant 1.000000e+00 : f32
    %109 = vector.broadcast %cst_31 : f32 to vector<8x128xf32>
    %110 = arith.addf %109, %108 : vector<8x128xf32>
    %111 = arith.divf %109, %110 : vector<8x128xf32>
    %112 = arith.mulf %111, %11 : vector<8x128xf32>
    %113 = arith.addf %112, %14 : vector<8x128xf32>
    %114 = vector.extract_strided_slice %113 {offsets = [0, 0], sizes = [8, 32], strides = [1, 1]} : vector<8x128xf32> to vector<8x32xf32>
    %115 = vector.extract_strided_slice %113 {offsets = [0, 32], sizes = [8, 32], strides = [1, 1]} : vector<8x128xf32> to vector<8x32xf32>
    %116 = vector.extract_strided_slice %113 {offsets = [0, 64], sizes = [8, 32], strides = [1, 1]} : vector<8x128xf32> to vector<8x32xf32>
    %117 = vector.extract_strided_slice %113 {offsets = [0, 96], sizes = [8, 32], strides = [1, 1]} : vector<8x128xf32> to vector<8x32xf32>
    %118 = arith.mulf %115, %74 : vector<8x32xf32>
    %119 = arith.mulf %114, %116 : vector<8x32xf32>
    %120 = arith.addf %118, %119 : vector<8x32xf32>
    %121 = math.tanh %120 : vector<8x32xf32>
    %122 = arith.mulf %117, %121 : vector<8x32xf32>
    %123 = vector.extract_strided_slice %26 {offsets = [16, 0], sizes = [8, 128], strides = [1, 1]} : vector<64x128xf32> to vector<8x128xf32>
    %124 = arith.truncf %97 : vector<8x32xf32> to vector<8x32xbf16>
    %cst_32 = arith.constant dense<0.000000e+00> : vector<8x128xf32>
    %125 = tpu.matmul %124, %17, %cst_32 {dimension_numbers = #tpu.dot_dimension_numbers<[1], [0], [0], [1], [0, 0, 1, 1], [], []>} : vector<8x32xbf16>, vector<32x128xbf16>, vector<8x128xf32> -> vector<8x128xf32>
    %126 = arith.addf %123, %125 : vector<8x128xf32>
    %127 = arith.mulf %126, %8 : vector<8x128xf32>
    %128 = arith.negf %127 : vector<8x128xf32>
    %129 = math.exp %128 : vector<8x128xf32>
    %cst_33 = arith.constant 1.000000e+00 : f32
    %130 = vector.broadcast %cst_33 : f32 to vector<8x128xf32>
    %131 = arith.addf %130, %129 : vector<8x128xf32>
    %132 = arith.divf %130, %131 : vector<8x128xf32>
    %133 = arith.mulf %132, %11 : vector<8x128xf32>
    %134 = arith.addf %133, %14 : vector<8x128xf32>
    %135 = vector.extract_strided_slice %134 {offsets = [0, 0], sizes = [8, 32], strides = [1, 1]} : vector<8x128xf32> to vector<8x32xf32>
    %136 = vector.extract_strided_slice %134 {offsets = [0, 32], sizes = [8, 32], strides = [1, 1]} : vector<8x128xf32> to vector<8x32xf32>
    %137 = vector.extract_strided_slice %134 {offsets = [0, 64], sizes = [8, 32], strides = [1, 1]} : vector<8x128xf32> to vector<8x32xf32>
    %138 = vector.extract_strided_slice %134 {offsets = [0, 96], sizes = [8, 32], strides = [1, 1]} : vector<8x128xf32> to vector<8x32xf32>
    %139 = arith.mulf %136, %95 : vector<8x32xf32>
    %140 = arith.mulf %135, %137 : vector<8x32xf32>
    %141 = arith.addf %139, %140 : vector<8x32xf32>
    %142 = math.tanh %141 : vector<8x32xf32>
    %143 = arith.mulf %138, %142 : vector<8x32xf32>
    %144 = arith.truncf %143 : vector<8x32xf32> to vector<8x32xbf16>
    %cst_34 = arith.constant dense<0.000000e+00> : vector<8x128xf32>
    %145 = tpu.matmul %144, %21, %cst_34 {dimension_numbers = #tpu.dot_dimension_numbers<[1], [0], [0], [1], [0, 0, 1, 1], [], []>} : vector<8x32xbf16>, vector<32x128xbf16>, vector<8x128xf32> -> vector<8x128xf32>
    %146 = vector.extract_strided_slice %15 {offsets = [1, 0], sizes = [1, 128], strides = [1, 1]} : vector<2x128xf32> to vector<1x128xf32>
    %147 = vector.broadcast %146 : vector<1x128xf32> to vector<8x128xf32>
    %148 = arith.addf %145, %147 : vector<8x128xf32>
    %149 = arith.truncf %122 : vector<8x32xf32> to vector<8x32xbf16>
    %cst_35 = arith.constant dense<0.000000e+00> : vector<8x128xf32>
    %150 = tpu.matmul %149, %19, %cst_35 {dimension_numbers = #tpu.dot_dimension_numbers<[1], [0], [0], [1], [0, 0, 1, 1], [], []>} : vector<8x32xbf16>, vector<32x128xbf16>, vector<8x128xf32> -> vector<8x128xf32>
    %151 = arith.addf %148, %150 : vector<8x128xf32>
    %152 = arith.mulf %151, %8 : vector<8x128xf32>
    %153 = arith.negf %152 : vector<8x128xf32>
    %154 = math.exp %153 : vector<8x128xf32>
    %cst_36 = arith.constant 1.000000e+00 : f32
    %155 = vector.broadcast %cst_36 : f32 to vector<8x128xf32>
    %156 = arith.addf %155, %154 : vector<8x128xf32>
    %157 = arith.divf %155, %156 : vector<8x128xf32>
    %158 = arith.mulf %157, %11 : vector<8x128xf32>
    %159 = arith.addf %158, %14 : vector<8x128xf32>
    %160 = vector.extract_strided_slice %159 {offsets = [0, 0], sizes = [8, 32], strides = [1, 1]} : vector<8x128xf32> to vector<8x32xf32>
    %161 = vector.extract_strided_slice %159 {offsets = [0, 32], sizes = [8, 32], strides = [1, 1]} : vector<8x128xf32> to vector<8x32xf32>
    %162 = vector.extract_strided_slice %159 {offsets = [0, 64], sizes = [8, 32], strides = [1, 1]} : vector<8x128xf32> to vector<8x32xf32>
    %163 = vector.extract_strided_slice %159 {offsets = [0, 96], sizes = [8, 32], strides = [1, 1]} : vector<8x128xf32> to vector<8x32xf32>
    %164 = arith.mulf %161, %120 : vector<8x32xf32>
    %165 = arith.mulf %160, %162 : vector<8x32xf32>
    %166 = arith.addf %164, %165 : vector<8x32xf32>
    %167 = math.tanh %166 : vector<8x32xf32>
    %168 = arith.mulf %163, %167 : vector<8x32xf32>
    %169 = vector.extract_strided_slice %26 {offsets = [24, 0], sizes = [8, 128], strides = [1, 1]} : vector<64x128xf32> to vector<8x128xf32>
    %170 = arith.truncf %143 : vector<8x32xf32> to vector<8x32xbf16>
    %cst_37 = arith.constant dense<0.000000e+00> : vector<8x128xf32>
    %171 = tpu.matmul %170, %17, %cst_37 {dimension_numbers = #tpu.dot_dimension_numbers<[1], [0], [0], [1], [0, 0, 1, 1], [], []>} : vector<8x32xbf16>, vector<32x128xbf16>, vector<8x128xf32> -> vector<8x128xf32>
    %172 = arith.addf %169, %171 : vector<8x128xf32>
    %173 = arith.mulf %172, %8 : vector<8x128xf32>
    %174 = arith.negf %173 : vector<8x128xf32>
    %175 = math.exp %174 : vector<8x128xf32>
    %cst_38 = arith.constant 1.000000e+00 : f32
    %176 = vector.broadcast %cst_38 : f32 to vector<8x128xf32>
    %177 = arith.addf %176, %175 : vector<8x128xf32>
    %178 = arith.divf %176, %177 : vector<8x128xf32>
    %179 = arith.mulf %178, %11 : vector<8x128xf32>
    %180 = arith.addf %179, %14 : vector<8x128xf32>
    %181 = vector.extract_strided_slice %180 {offsets = [0, 0], sizes = [8, 32], strides = [1, 1]} : vector<8x128xf32> to vector<8x32xf32>
    %182 = vector.extract_strided_slice %180 {offsets = [0, 32], sizes = [8, 32], strides = [1, 1]} : vector<8x128xf32> to vector<8x32xf32>
    %183 = vector.extract_strided_slice %180 {offsets = [0, 64], sizes = [8, 32], strides = [1, 1]} : vector<8x128xf32> to vector<8x32xf32>
    %184 = vector.extract_strided_slice %180 {offsets = [0, 96], sizes = [8, 32], strides = [1, 1]} : vector<8x128xf32> to vector<8x32xf32>
    %185 = arith.mulf %182, %141 : vector<8x32xf32>
    %186 = arith.mulf %181, %183 : vector<8x32xf32>
    %187 = arith.addf %185, %186 : vector<8x32xf32>
    %188 = math.tanh %187 : vector<8x32xf32>
    %189 = arith.mulf %184, %188 : vector<8x32xf32>
    %190 = arith.truncf %189 : vector<8x32xf32> to vector<8x32xbf16>
    %cst_39 = arith.constant dense<0.000000e+00> : vector<8x128xf32>
    %191 = tpu.matmul %190, %21, %cst_39 {dimension_numbers = #tpu.dot_dimension_numbers<[1], [0], [0], [1], [0, 0, 1, 1], [], []>} : vector<8x32xbf16>, vector<32x128xbf16>, vector<8x128xf32> -> vector<8x128xf32>
    %192 = vector.extract_strided_slice %15 {offsets = [1, 0], sizes = [1, 128], strides = [1, 1]} : vector<2x128xf32> to vector<1x128xf32>
    %193 = vector.broadcast %192 : vector<1x128xf32> to vector<8x128xf32>
    %194 = arith.addf %191, %193 : vector<8x128xf32>
    %195 = arith.truncf %168 : vector<8x32xf32> to vector<8x32xbf16>
    %cst_40 = arith.constant dense<0.000000e+00> : vector<8x128xf32>
    %196 = tpu.matmul %195, %19, %cst_40 {dimension_numbers = #tpu.dot_dimension_numbers<[1], [0], [0], [1], [0, 0, 1, 1], [], []>} : vector<8x32xbf16>, vector<32x128xbf16>, vector<8x128xf32> -> vector<8x128xf32>
    %197 = arith.addf %194, %196 : vector<8x128xf32>
    %198 = arith.mulf %197, %8 : vector<8x128xf32>
    %199 = arith.negf %198 : vector<8x128xf32>
    %200 = math.exp %199 : vector<8x128xf32>
    %cst_41 = arith.constant 1.000000e+00 : f32
    %201 = vector.broadcast %cst_41 : f32 to vector<8x128xf32>
    %202 = arith.addf %201, %200 : vector<8x128xf32>
    %203 = arith.divf %201, %202 : vector<8x128xf32>
    %204 = arith.mulf %203, %11 : vector<8x128xf32>
    %205 = arith.addf %204, %14 : vector<8x128xf32>
    %206 = vector.extract_strided_slice %205 {offsets = [0, 0], sizes = [8, 32], strides = [1, 1]} : vector<8x128xf32> to vector<8x32xf32>
    %207 = vector.extract_strided_slice %205 {offsets = [0, 32], sizes = [8, 32], strides = [1, 1]} : vector<8x128xf32> to vector<8x32xf32>
    %208 = vector.extract_strided_slice %205 {offsets = [0, 64], sizes = [8, 32], strides = [1, 1]} : vector<8x128xf32> to vector<8x32xf32>
    %209 = vector.extract_strided_slice %205 {offsets = [0, 96], sizes = [8, 32], strides = [1, 1]} : vector<8x128xf32> to vector<8x32xf32>
    %210 = arith.mulf %207, %166 : vector<8x32xf32>
    %211 = arith.mulf %206, %208 : vector<8x32xf32>
    %212 = arith.addf %210, %211 : vector<8x32xf32>
    %213 = math.tanh %212 : vector<8x32xf32>
    %214 = arith.mulf %209, %213 : vector<8x32xf32>
    %215 = vector.extract_strided_slice %26 {offsets = [32, 0], sizes = [8, 128], strides = [1, 1]} : vector<64x128xf32> to vector<8x128xf32>
    %216 = arith.truncf %189 : vector<8x32xf32> to vector<8x32xbf16>
    %cst_42 = arith.constant dense<0.000000e+00> : vector<8x128xf32>
    %217 = tpu.matmul %216, %17, %cst_42 {dimension_numbers = #tpu.dot_dimension_numbers<[1], [0], [0], [1], [0, 0, 1, 1], [], []>} : vector<8x32xbf16>, vector<32x128xbf16>, vector<8x128xf32> -> vector<8x128xf32>
    %218 = arith.addf %215, %217 : vector<8x128xf32>
    %219 = arith.mulf %218, %8 : vector<8x128xf32>
    %220 = arith.negf %219 : vector<8x128xf32>
    %221 = math.exp %220 : vector<8x128xf32>
    %cst_43 = arith.constant 1.000000e+00 : f32
    %222 = vector.broadcast %cst_43 : f32 to vector<8x128xf32>
    %223 = arith.addf %222, %221 : vector<8x128xf32>
    %224 = arith.divf %222, %223 : vector<8x128xf32>
    %225 = arith.mulf %224, %11 : vector<8x128xf32>
    %226 = arith.addf %225, %14 : vector<8x128xf32>
    %227 = vector.extract_strided_slice %226 {offsets = [0, 0], sizes = [8, 32], strides = [1, 1]} : vector<8x128xf32> to vector<8x32xf32>
    %228 = vector.extract_strided_slice %226 {offsets = [0, 32], sizes = [8, 32], strides = [1, 1]} : vector<8x128xf32> to vector<8x32xf32>
    %229 = vector.extract_strided_slice %226 {offsets = [0, 64], sizes = [8, 32], strides = [1, 1]} : vector<8x128xf32> to vector<8x32xf32>
    %230 = vector.extract_strided_slice %226 {offsets = [0, 96], sizes = [8, 32], strides = [1, 1]} : vector<8x128xf32> to vector<8x32xf32>
    %231 = arith.mulf %228, %187 : vector<8x32xf32>
    %232 = arith.mulf %227, %229 : vector<8x32xf32>
    %233 = arith.addf %231, %232 : vector<8x32xf32>
    %234 = math.tanh %233 : vector<8x32xf32>
    %235 = arith.mulf %230, %234 : vector<8x32xf32>
    %236 = arith.truncf %235 : vector<8x32xf32> to vector<8x32xbf16>
    %cst_44 = arith.constant dense<0.000000e+00> : vector<8x128xf32>
    %237 = tpu.matmul %236, %21, %cst_44 {dimension_numbers = #tpu.dot_dimension_numbers<[1], [0], [0], [1], [0, 0, 1, 1], [], []>} : vector<8x32xbf16>, vector<32x128xbf16>, vector<8x128xf32> -> vector<8x128xf32>
    %238 = vector.extract_strided_slice %15 {offsets = [1, 0], sizes = [1, 128], strides = [1, 1]} : vector<2x128xf32> to vector<1x128xf32>
    %239 = vector.broadcast %238 : vector<1x128xf32> to vector<8x128xf32>
    %240 = arith.addf %237, %239 : vector<8x128xf32>
    %241 = arith.truncf %214 : vector<8x32xf32> to vector<8x32xbf16>
    %cst_45 = arith.constant dense<0.000000e+00> : vector<8x128xf32>
    %242 = tpu.matmul %241, %19, %cst_45 {dimension_numbers = #tpu.dot_dimension_numbers<[1], [0], [0], [1], [0, 0, 1, 1], [], []>} : vector<8x32xbf16>, vector<32x128xbf16>, vector<8x128xf32> -> vector<8x128xf32>
    %243 = arith.addf %240, %242 : vector<8x128xf32>
    %244 = arith.mulf %243, %8 : vector<8x128xf32>
    %245 = arith.negf %244 : vector<8x128xf32>
    %246 = math.exp %245 : vector<8x128xf32>
    %cst_46 = arith.constant 1.000000e+00 : f32
    %247 = vector.broadcast %cst_46 : f32 to vector<8x128xf32>
    %248 = arith.addf %247, %246 : vector<8x128xf32>
    %249 = arith.divf %247, %248 : vector<8x128xf32>
    %250 = arith.mulf %249, %11 : vector<8x128xf32>
    %251 = arith.addf %250, %14 : vector<8x128xf32>
    %252 = vector.extract_strided_slice %251 {offsets = [0, 0], sizes = [8, 32], strides = [1, 1]} : vector<8x128xf32> to vector<8x32xf32>
    %253 = vector.extract_strided_slice %251 {offsets = [0, 32], sizes = [8, 32], strides = [1, 1]} : vector<8x128xf32> to vector<8x32xf32>
    %254 = vector.extract_strided_slice %251 {offsets = [0, 64], sizes = [8, 32], strides = [1, 1]} : vector<8x128xf32> to vector<8x32xf32>
    %255 = vector.extract_strided_slice %251 {offsets = [0, 96], sizes = [8, 32], strides = [1, 1]} : vector<8x128xf32> to vector<8x32xf32>
    %256 = arith.mulf %253, %212 : vector<8x32xf32>
    %257 = arith.mulf %252, %254 : vector<8x32xf32>
    %258 = arith.addf %256, %257 : vector<8x32xf32>
    %259 = math.tanh %258 : vector<8x32xf32>
    %260 = arith.mulf %255, %259 : vector<8x32xf32>
    %261 = vector.extract_strided_slice %26 {offsets = [40, 0], sizes = [8, 128], strides = [1, 1]} : vector<64x128xf32> to vector<8x128xf32>
    %262 = arith.truncf %235 : vector<8x32xf32> to vector<8x32xbf16>
    %cst_47 = arith.constant dense<0.000000e+00> : vector<8x128xf32>
    %263 = tpu.matmul %262, %17, %cst_47 {dimension_numbers = #tpu.dot_dimension_numbers<[1], [0], [0], [1], [0, 0, 1, 1], [], []>} : vector<8x32xbf16>, vector<32x128xbf16>, vector<8x128xf32> -> vector<8x128xf32>
    %264 = arith.addf %261, %263 : vector<8x128xf32>
    %265 = arith.mulf %264, %8 : vector<8x128xf32>
    %266 = arith.negf %265 : vector<8x128xf32>
    %267 = math.exp %266 : vector<8x128xf32>
    %cst_48 = arith.constant 1.000000e+00 : f32
    %268 = vector.broadcast %cst_48 : f32 to vector<8x128xf32>
    %269 = arith.addf %268, %267 : vector<8x128xf32>
    %270 = arith.divf %268, %269 : vector<8x128xf32>
    %271 = arith.mulf %270, %11 : vector<8x128xf32>
    %272 = arith.addf %271, %14 : vector<8x128xf32>
    %273 = vector.extract_strided_slice %272 {offsets = [0, 0], sizes = [8, 32], strides = [1, 1]} : vector<8x128xf32> to vector<8x32xf32>
    %274 = vector.extract_strided_slice %272 {offsets = [0, 32], sizes = [8, 32], strides = [1, 1]} : vector<8x128xf32> to vector<8x32xf32>
    %275 = vector.extract_strided_slice %272 {offsets = [0, 64], sizes = [8, 32], strides = [1, 1]} : vector<8x128xf32> to vector<8x32xf32>
    %276 = vector.extract_strided_slice %272 {offsets = [0, 96], sizes = [8, 32], strides = [1, 1]} : vector<8x128xf32> to vector<8x32xf32>
    %277 = arith.mulf %274, %233 : vector<8x32xf32>
    %278 = arith.mulf %273, %275 : vector<8x32xf32>
    %279 = arith.addf %277, %278 : vector<8x32xf32>
    %280 = math.tanh %279 : vector<8x32xf32>
    %281 = arith.mulf %276, %280 : vector<8x32xf32>
    %282 = arith.truncf %281 : vector<8x32xf32> to vector<8x32xbf16>
    %cst_49 = arith.constant dense<0.000000e+00> : vector<8x128xf32>
    %283 = tpu.matmul %282, %21, %cst_49 {dimension_numbers = #tpu.dot_dimension_numbers<[1], [0], [0], [1], [0, 0, 1, 1], [], []>} : vector<8x32xbf16>, vector<32x128xbf16>, vector<8x128xf32> -> vector<8x128xf32>
    %284 = vector.extract_strided_slice %15 {offsets = [1, 0], sizes = [1, 128], strides = [1, 1]} : vector<2x128xf32> to vector<1x128xf32>
    %285 = vector.broadcast %284 : vector<1x128xf32> to vector<8x128xf32>
    %286 = arith.addf %283, %285 : vector<8x128xf32>
    %287 = arith.truncf %260 : vector<8x32xf32> to vector<8x32xbf16>
    %cst_50 = arith.constant dense<0.000000e+00> : vector<8x128xf32>
    %288 = tpu.matmul %287, %19, %cst_50 {dimension_numbers = #tpu.dot_dimension_numbers<[1], [0], [0], [1], [0, 0, 1, 1], [], []>} : vector<8x32xbf16>, vector<32x128xbf16>, vector<8x128xf32> -> vector<8x128xf32>
    %289 = arith.addf %286, %288 : vector<8x128xf32>
    %290 = arith.mulf %289, %8 : vector<8x128xf32>
    %291 = arith.negf %290 : vector<8x128xf32>
    %292 = math.exp %291 : vector<8x128xf32>
    %cst_51 = arith.constant 1.000000e+00 : f32
    %293 = vector.broadcast %cst_51 : f32 to vector<8x128xf32>
    %294 = arith.addf %293, %292 : vector<8x128xf32>
    %295 = arith.divf %293, %294 : vector<8x128xf32>
    %296 = arith.mulf %295, %11 : vector<8x128xf32>
    %297 = arith.addf %296, %14 : vector<8x128xf32>
    %298 = vector.extract_strided_slice %297 {offsets = [0, 0], sizes = [8, 32], strides = [1, 1]} : vector<8x128xf32> to vector<8x32xf32>
    %299 = vector.extract_strided_slice %297 {offsets = [0, 32], sizes = [8, 32], strides = [1, 1]} : vector<8x128xf32> to vector<8x32xf32>
    %300 = vector.extract_strided_slice %297 {offsets = [0, 64], sizes = [8, 32], strides = [1, 1]} : vector<8x128xf32> to vector<8x32xf32>
    %301 = vector.extract_strided_slice %297 {offsets = [0, 96], sizes = [8, 32], strides = [1, 1]} : vector<8x128xf32> to vector<8x32xf32>
    %302 = arith.mulf %299, %258 : vector<8x32xf32>
    %303 = arith.mulf %298, %300 : vector<8x32xf32>
    %304 = arith.addf %302, %303 : vector<8x32xf32>
    %305 = math.tanh %304 : vector<8x32xf32>
    %306 = arith.mulf %301, %305 : vector<8x32xf32>
    %307 = vector.extract_strided_slice %26 {offsets = [48, 0], sizes = [8, 128], strides = [1, 1]} : vector<64x128xf32> to vector<8x128xf32>
    %308 = arith.truncf %281 : vector<8x32xf32> to vector<8x32xbf16>
    %cst_52 = arith.constant dense<0.000000e+00> : vector<8x128xf32>
    %309 = tpu.matmul %308, %17, %cst_52 {dimension_numbers = #tpu.dot_dimension_numbers<[1], [0], [0], [1], [0, 0, 1, 1], [], []>} : vector<8x32xbf16>, vector<32x128xbf16>, vector<8x128xf32> -> vector<8x128xf32>
    %310 = arith.addf %307, %309 : vector<8x128xf32>
    %311 = arith.mulf %310, %8 : vector<8x128xf32>
    %312 = arith.negf %311 : vector<8x128xf32>
    %313 = math.exp %312 : vector<8x128xf32>
    %cst_53 = arith.constant 1.000000e+00 : f32
    %314 = vector.broadcast %cst_53 : f32 to vector<8x128xf32>
    %315 = arith.addf %314, %313 : vector<8x128xf32>
    %316 = arith.divf %314, %315 : vector<8x128xf32>
    %317 = arith.mulf %316, %11 : vector<8x128xf32>
    %318 = arith.addf %317, %14 : vector<8x128xf32>
    %319 = vector.extract_strided_slice %318 {offsets = [0, 0], sizes = [8, 32], strides = [1, 1]} : vector<8x128xf32> to vector<8x32xf32>
    %320 = vector.extract_strided_slice %318 {offsets = [0, 32], sizes = [8, 32], strides = [1, 1]} : vector<8x128xf32> to vector<8x32xf32>
    %321 = vector.extract_strided_slice %318 {offsets = [0, 64], sizes = [8, 32], strides = [1, 1]} : vector<8x128xf32> to vector<8x32xf32>
    %322 = vector.extract_strided_slice %318 {offsets = [0, 96], sizes = [8, 32], strides = [1, 1]} : vector<8x128xf32> to vector<8x32xf32>
    %323 = arith.mulf %320, %279 : vector<8x32xf32>
    %324 = arith.mulf %319, %321 : vector<8x32xf32>
    %325 = arith.addf %323, %324 : vector<8x32xf32>
    %326 = math.tanh %325 : vector<8x32xf32>
    %327 = arith.mulf %322, %326 : vector<8x32xf32>
    %328 = arith.truncf %327 : vector<8x32xf32> to vector<8x32xbf16>
    %cst_54 = arith.constant dense<0.000000e+00> : vector<8x128xf32>
    %329 = tpu.matmul %328, %21, %cst_54 {dimension_numbers = #tpu.dot_dimension_numbers<[1], [0], [0], [1], [0, 0, 1, 1], [], []>} : vector<8x32xbf16>, vector<32x128xbf16>, vector<8x128xf32> -> vector<8x128xf32>
    %330 = vector.extract_strided_slice %15 {offsets = [1, 0], sizes = [1, 128], strides = [1, 1]} : vector<2x128xf32> to vector<1x128xf32>
    %331 = vector.broadcast %330 : vector<1x128xf32> to vector<8x128xf32>
    %332 = arith.addf %329, %331 : vector<8x128xf32>
    %333 = arith.truncf %306 : vector<8x32xf32> to vector<8x32xbf16>
    %cst_55 = arith.constant dense<0.000000e+00> : vector<8x128xf32>
    %334 = tpu.matmul %333, %19, %cst_55 {dimension_numbers = #tpu.dot_dimension_numbers<[1], [0], [0], [1], [0, 0, 1, 1], [], []>} : vector<8x32xbf16>, vector<32x128xbf16>, vector<8x128xf32> -> vector<8x128xf32>
    %335 = arith.addf %332, %334 : vector<8x128xf32>
    %336 = arith.mulf %335, %8 : vector<8x128xf32>
    %337 = arith.negf %336 : vector<8x128xf32>
    %338 = math.exp %337 : vector<8x128xf32>
    %cst_56 = arith.constant 1.000000e+00 : f32
    %339 = vector.broadcast %cst_56 : f32 to vector<8x128xf32>
    %340 = arith.addf %339, %338 : vector<8x128xf32>
    %341 = arith.divf %339, %340 : vector<8x128xf32>
    %342 = arith.mulf %341, %11 : vector<8x128xf32>
    %343 = arith.addf %342, %14 : vector<8x128xf32>
    %344 = vector.extract_strided_slice %343 {offsets = [0, 0], sizes = [8, 32], strides = [1, 1]} : vector<8x128xf32> to vector<8x32xf32>
    %345 = vector.extract_strided_slice %343 {offsets = [0, 32], sizes = [8, 32], strides = [1, 1]} : vector<8x128xf32> to vector<8x32xf32>
    %346 = vector.extract_strided_slice %343 {offsets = [0, 64], sizes = [8, 32], strides = [1, 1]} : vector<8x128xf32> to vector<8x32xf32>
    %347 = vector.extract_strided_slice %343 {offsets = [0, 96], sizes = [8, 32], strides = [1, 1]} : vector<8x128xf32> to vector<8x32xf32>
    %348 = arith.mulf %345, %304 : vector<8x32xf32>
    %349 = arith.mulf %344, %346 : vector<8x32xf32>
    %350 = arith.addf %348, %349 : vector<8x32xf32>
    %351 = math.tanh %350 : vector<8x32xf32>
    %352 = arith.mulf %347, %351 : vector<8x32xf32>
    %353 = vector.extract_strided_slice %26 {offsets = [56, 0], sizes = [8, 128], strides = [1, 1]} : vector<64x128xf32> to vector<8x128xf32>
    %354 = arith.truncf %327 : vector<8x32xf32> to vector<8x32xbf16>
    %cst_57 = arith.constant dense<0.000000e+00> : vector<8x128xf32>
    %355 = tpu.matmul %354, %17, %cst_57 {dimension_numbers = #tpu.dot_dimension_numbers<[1], [0], [0], [1], [0, 0, 1, 1], [], []>} : vector<8x32xbf16>, vector<32x128xbf16>, vector<8x128xf32> -> vector<8x128xf32>
    %356 = arith.addf %353, %355 : vector<8x128xf32>
    %357 = arith.mulf %356, %8 : vector<8x128xf32>
    %358 = arith.negf %357 : vector<8x128xf32>
    %359 = math.exp %358 : vector<8x128xf32>
    %cst_58 = arith.constant 1.000000e+00 : f32
    %360 = vector.broadcast %cst_58 : f32 to vector<8x128xf32>
    %361 = arith.addf %360, %359 : vector<8x128xf32>
    %362 = arith.divf %360, %361 : vector<8x128xf32>
    %363 = arith.mulf %362, %11 : vector<8x128xf32>
    %364 = arith.addf %363, %14 : vector<8x128xf32>
    %365 = vector.extract_strided_slice %364 {offsets = [0, 0], sizes = [8, 32], strides = [1, 1]} : vector<8x128xf32> to vector<8x32xf32>
    %366 = vector.extract_strided_slice %364 {offsets = [0, 32], sizes = [8, 32], strides = [1, 1]} : vector<8x128xf32> to vector<8x32xf32>
    %367 = vector.extract_strided_slice %364 {offsets = [0, 64], sizes = [8, 32], strides = [1, 1]} : vector<8x128xf32> to vector<8x32xf32>
    %368 = vector.extract_strided_slice %364 {offsets = [0, 96], sizes = [8, 32], strides = [1, 1]} : vector<8x128xf32> to vector<8x32xf32>
    %369 = arith.mulf %366, %325 : vector<8x32xf32>
    %370 = arith.mulf %365, %367 : vector<8x32xf32>
    %371 = arith.addf %369, %370 : vector<8x32xf32>
    %372 = math.tanh %371 : vector<8x32xf32>
    %373 = arith.mulf %368, %372 : vector<8x32xf32>
    %374 = arith.truncf %373 : vector<8x32xf32> to vector<8x32xbf16>
    %cst_59 = arith.constant dense<0.000000e+00> : vector<8x128xf32>
    %375 = tpu.matmul %374, %21, %cst_59 {dimension_numbers = #tpu.dot_dimension_numbers<[1], [0], [0], [1], [0, 0, 1, 1], [], []>} : vector<8x32xbf16>, vector<32x128xbf16>, vector<8x128xf32> -> vector<8x128xf32>
    %376 = vector.extract_strided_slice %15 {offsets = [1, 0], sizes = [1, 128], strides = [1, 1]} : vector<2x128xf32> to vector<1x128xf32>
    %377 = vector.broadcast %376 : vector<1x128xf32> to vector<8x128xf32>
    %378 = arith.addf %375, %377 : vector<8x128xf32>
    %379 = arith.truncf %352 : vector<8x32xf32> to vector<8x32xbf16>
    %cst_60 = arith.constant dense<0.000000e+00> : vector<8x128xf32>
    %380 = tpu.matmul %379, %19, %cst_60 {dimension_numbers = #tpu.dot_dimension_numbers<[1], [0], [0], [1], [0, 0, 1, 1], [], []>} : vector<8x32xbf16>, vector<32x128xbf16>, vector<8x128xf32> -> vector<8x128xf32>
    %381 = arith.addf %378, %380 : vector<8x128xf32>
    %382 = arith.mulf %381, %8 : vector<8x128xf32>
    %383 = arith.negf %382 : vector<8x128xf32>
    %384 = math.exp %383 : vector<8x128xf32>
    %cst_61 = arith.constant 1.000000e+00 : f32
    %385 = vector.broadcast %cst_61 : f32 to vector<8x128xf32>
    %386 = arith.addf %385, %384 : vector<8x128xf32>
    %387 = arith.divf %385, %386 : vector<8x128xf32>
    %388 = arith.mulf %387, %11 : vector<8x128xf32>
    %389 = arith.addf %388, %14 : vector<8x128xf32>
    %390 = vector.extract_strided_slice %389 {offsets = [0, 0], sizes = [8, 32], strides = [1, 1]} : vector<8x128xf32> to vector<8x32xf32>
    %391 = vector.extract_strided_slice %389 {offsets = [0, 32], sizes = [8, 32], strides = [1, 1]} : vector<8x128xf32> to vector<8x32xf32>
    %392 = vector.extract_strided_slice %389 {offsets = [0, 64], sizes = [8, 32], strides = [1, 1]} : vector<8x128xf32> to vector<8x32xf32>
    %393 = vector.extract_strided_slice %389 {offsets = [0, 96], sizes = [8, 32], strides = [1, 1]} : vector<8x128xf32> to vector<8x32xf32>
    %394 = arith.mulf %391, %350 : vector<8x32xf32>
    %395 = arith.mulf %390, %392 : vector<8x32xf32>
    %396 = arith.addf %394, %395 : vector<8x32xf32>
    %397 = math.tanh %396 : vector<8x32xf32>
    %398 = arith.mulf %393, %397 : vector<8x32xf32>
    %c0_62 = arith.constant 0 : index
    %c0_63 = arith.constant 0 : index
    %399 = vector.load %arg8[%c0_62, %c0_63] : memref<2x16xf32, #tpu.memory_space<vmem>>, vector<2x16xf32>
    %c0_64 = arith.constant 0 : index
    %c0_65 = arith.constant 0 : index
    %400 = vector.load %arg5[%c0_64, %c0_65] : memref<8x6xf32, #tpu.memory_space<vmem>>, vector<8x6xf32>
    %401 = arith.truncf %400 : vector<8x6xf32> to vector<8x6xbf16>
    %c0_66 = arith.constant 0 : index
    %c0_67 = arith.constant 0 : index
    %402 = vector.load %arg6[%c0_66, %c0_67] : memref<6x16xbf16, #tpu.memory_space<vmem>>, vector<6x16xbf16>
    %cst_68 = arith.constant dense<0.000000e+00> : vector<8x16xf32>
    %403 = tpu.matmul %401, %402, %cst_68 {dimension_numbers = #tpu.dot_dimension_numbers<[1], [0], [0], [1], [0, 0, 1, 1], [], []>} : vector<8x6xbf16>, vector<6x16xbf16>, vector<8x16xf32> -> vector<8x16xf32>
    %404 = vector.extract_strided_slice %399 {offsets = [0, 0], sizes = [1, 16], strides = [1, 1]} : vector<2x16xf32> to vector<1x16xf32>
    %405 = vector.broadcast %404 : vector<1x16xf32> to vector<8x16xf32>
    %406 = arith.addf %403, %405 : vector<8x16xf32>
    %cst_69 = arith.constant 0.000000e+00 : f32
    %407 = vector.broadcast %cst_69 : f32 to vector<8x16xf32>
    %408 = arith.maximumf %406, %407 : vector<8x16xf32>
    %409 = arith.truncf %408 : vector<8x16xf32> to vector<8x16xbf16>
    %c0_70 = arith.constant 0 : index
    %c0_71 = arith.constant 0 : index
    %410 = vector.load %arg7[%c0_70, %c0_71] : memref<16x16xbf16, #tpu.memory_space<vmem>>, vector<16x16xbf16>
    %cst_72 = arith.constant dense<0.000000e+00> : vector<8x16xf32>
    %411 = tpu.matmul %409, %410, %cst_72 {dimension_numbers = #tpu.dot_dimension_numbers<[1], [0], [0], [1], [0, 0, 1, 1], [], []>} : vector<8x16xbf16>, vector<16x16xbf16>, vector<8x16xf32> -> vector<8x16xf32>
    %412 = vector.extract_strided_slice %399 {offsets = [1, 0], sizes = [1, 16], strides = [1, 1]} : vector<2x16xf32> to vector<1x16xf32>
    %413 = vector.broadcast %412 : vector<1x16xf32> to vector<8x16xf32>
    %414 = arith.addf %411, %413 : vector<8x16xf32>
    %cst_73 = arith.constant 0.000000e+00 : f32
    %415 = vector.broadcast %cst_73 : f32 to vector<8x16xf32>
    %416 = arith.maximumf %414, %415 : vector<8x16xf32>
    %417 = tpu.concatenate %398, %416 in 1 : vector<8x32xf32>, vector<8x16xf32> -> vector<8x48xf32>
    %418 = arith.truncf %417 : vector<8x48xf32> to vector<8x48xbf16>
    %c0_74 = arith.constant 0 : index
    %c0_75 = arith.constant 0 : index
    %419 = vector.load %arg9[%c0_74, %c0_75] : memref<48x1xbf16, #tpu.memory_space<vmem>>, vector<48x1xbf16>
    %cst_76 = arith.constant dense<0.000000e+00> : vector<8x1xf32>
    %420 = tpu.matmul %418, %419, %cst_76 {dimension_numbers = #tpu.dot_dimension_numbers<[1], [0], [0], [1], [0, 0, 1, 1], [], []>} : vector<8x48xbf16>, vector<48x1xbf16>, vector<8x1xf32> -> vector<8x1xf32>
    %c0_77 = arith.constant 0 : index
    %c0_78 = arith.constant 0 : index
    %421 = vector.load %arg10[%c0_77, %c0_78] : memref<1x1xf32, #tpu.memory_space<vmem>>, vector<1x1xf32>
    %422 = vector.broadcast %421 : vector<1x1xf32> to vector<8x1xf32>
    %423 = arith.addf %420, %422 : vector<8x1xf32>
    %c0_79 = arith.constant 0 : index
    %c0_80 = arith.constant 0 : index
    %424 = vector.load %arg11[%c0_79, %c0_80] : memref<8x1xf32, #tpu.memory_space<vmem>>, vector<8x1xf32>
    tpu.vector_store %arg11[%c0_79, %c0_80], %423 {strides = array<i32>} : memref<8x1xf32, #tpu.memory_space<vmem>>, vector<8x1xf32>,
    return
  }
}

</mosaic_0001>

<bundles_post_ra>
// kernel: multi_branch_lstm_forward.1
= control target key start
LH: loop header
LB: loop body
LE: loop exit
PB: predicated region body
PF: predicated region fallthrough
CT: control target
= control target key end

     0   :  { %vm108_vm0 = vcmask 1041408   ;;  %vm95_vm1 = vcmask 31744   ;;  %v2464_v4 = vmov 0.0   ;;  %vm2465_vm2 = vmmov 0   ;;  %s2469_s12 = smov 32   ;;  %s3021_s1 = inlined_call_operand.vmem [shape: bf16[4,128], index: 1, kind: input, shape index: {}]   ;;  %s3022_s0 = inlined_call_operand.vmem [shape: bf16[64,4], index: 0, kind: input, shape index: {}]   ;;  %s3023_s3 = inlined_call_operand.vmem [shape: bf16[2,32,128], index: 3, kind: input, shape index: {}]   ;;  %s3024_s4 = inlined_call_operand.vmem [shape: f32[2,128], index: 4, kind: input, shape index: {}]   ;;  %s3025_s2 = inlined_call_operand.vmem [shape: bf16[32,128], index: 2, kind: input, shape index: {}]   ;;  %s3026_s6 = inlined_call_operand.vmem [shape: bf16[6,16], index: 6, kind: input, shape index: {}]   ;;  %s3027_s5 = inlined_call_operand.vmem [shape: f32[8,6], index: 5, kind: input, shape index: {}]   ;;  %s3028_s8 = inlined_call_operand.vmem [shape: f32[2,16], index: 8, kind: input, shape index: {}]   ;;  %s3029_s7 = inlined_call_operand.vmem [shape: bf16[16,16], index: 7, kind: input, shape index: {}]   ;;  %s3030_s9 = inlined_call_operand.vmem [shape: bf16[48,1], index: 9, kind: input, shape index: {}]   ;;  %s3031_s10 = inlined_call_operand.<no memory space> [shape: f32[1,1], index: 10, kind: input, shape index: {}]   ;;  %s3032_s11 = inlined_call_operand.vmem [shape: f32[8,1], index: 11, kind: output, shape index: {}]  }
   0x1   :  { %v58_v0 = vld [vmem:[%s3021_s1] sm:$0x3]  ;;  %v2352_v2 = vld [vmem:[%s3022_s0 + $0x10] sm:$0xff]   ;;  %v2353_v3 = vld [vmem:[%s3022_s0 + $0x18] sm:$0xff]   ;;  %v2466_v9 = vmov 0   ;;  %v41_v10 = vlaneseq  ;;  %v2467_v33 = vmov 1.0  }
   0x2   :  { %2340 = vmatprep.subr.msk.bf16.mxu1 %vm108_vm0, %v58_v0  ;;  %v110_v1 = vsel %vm108_vm0, %v58_v0, 0  ;;  %2339 = vmatprep.subr.msk.bf16.mxu0 %vm108_vm0, %v58_v0  ;;  %v2544_v5 = vld [vmem:[%s3023_s3] sm:$0xff]   ;;  %v2356_v7 = vld [vmem:[%s3022_s0 + $0x8] sm:$0xff]   ;;  %vm189_vm6 = vcmask 261120   ;;  %v2641_v59 = vld [vmem:[%s3023_s3 + $0x10] sm:$0xff]   ;;  %vm1730_vm7 = vcmask 1042432  }
   0x3   :  { %2298 = vmatpush3.bf16.msra.mxu1 %v110_v1  ;;  %2074 = vmatpush3.bf16.msra.mxu0 %v110_v1  ;;  %v2355_v6 = vld [vmem:[%s3022_s0] sm:$0xff]   ;;  %v2559_v8 = vld [vmem:[%s3023_s3 + $0x8] sm:$0xff]   ;;  %v2576_v11 = vshrl.u32 %v41_v10, 7  ;;  %v42_v15 = vand.u32 127, %v41_v10  ;;  %v2649_v61 = vld [vmem:[%s3023_s3 + $0x18] sm:$0xff]   ;;  %vm1726_vm8 = vcmask 48128  }
   0x4   :  { %2079 = vmatprep.mubr.msk.bf16.mxu1 %vm95_vm1, %v2352_v2  ;;  %2083 = vmatprep.subr.bf16.mxu1 %v2464_v4  ;;  %v2582_v13 = vld [vmem:[%s3024_s4] sm:$0x3]  ;;  %s2468_s4 = smov 64   ;;  %v2631_v54 = vld [vmem:[%s3025_s2 + $0x8] sm:$0xff]   ;;  %vm1788_vm9 = vcmask 130048   ;;  %vm1874_vm10 = vcmask 392192  }
   0x5   :  { %2107 = vmatprep.subr.bf16.mxu0 %v2464_v4  ;;  %2075 = vmatprep.mubr.msk.bf16.mxu0 %vm95_vm1, %v2355_v6  ;;  %v73_v12 = vsub.s32 0, %v2576_v11  ;;  %vm43_vm3 = vcmp.ge.s32.totalorder %v42_v15, 64  ;;  %vm44_vm4 = vcmp.lt.s32.totalorder %v42_v15, 96  ;;  %v2625_v53 = vld [vmem:[%s3025_s2] sm:$0xff]   ;;  %vm1918_vm11 = vcmask 7168  }
   0x6   :  { %2080 = vmatmul.mubr.msk.bf16.vlgmr.msra.gmra.mrb[0].mxu1 %vm95_vm1, %v2353_v3  ;;  %2076 = vmatmul.mubr.msk.bf16.vlgmr.msra.gmra.mrb[0].mxu0 %vm95_vm1, %v2356_v7  ;;  %vm2597_vm5 = vmand %vm43_vm3, %vm44_vm4  ;;  %v263_v7 = vsub.s32 1, %v2576_v11 }
   0x7   :  { %2084 = vmatpush3.bf16.msra.mxu1 %v2544_v5  ;;  %2087 = vmatprep.mubr.msk.bf16.mxu1 %vm2465_vm2, %v2464_v4  ;;  %v74_v14 = vrot.slane %v2582_v13, %v73_v12  ;;  %v2607_v34 = vsel %vm2597_vm5, 2.0, %v2467_v33  ;;  %v2613_v45 = vsel %vm2597_vm5, -1.0, %v2464_v4 }
   0x8   :  { %2085 = vmatprep.subr.bf16.mxu1 %v2464_v4  ;;  %2108 = vmatpush3.bf16.msra.mxu0 %v2544_v5 }
   0x9   :  { %2109 = vmatprep.subr.bf16.mxu0 %v2464_v4  ;;  %2111 = vmatprep.mubr.msk.bf16.mxu0 %vm2465_vm2, %v2464_v4 }
   0xb   :  { %2086 = vmatpush3.bf16.msra.mxu1 %v2559_v8 }
   0xc   :  { %2091 = vmatprep.subr.bf16.mxu1 %v2464_v4  ;;  %2110 = vmatpush3.bf16.msra.mxu0 %v2559_v8 }
   0xd   :  { %2115 = vmatprep.subr.bf16.mxu0 %v2464_v4 }
   0xe   :  { %2088 = vmatmul.mubr.bf16.vlgmr.msra.gmra.mrb[4].mxu1 %v2466_v9 }
   0xf   :  { %2095 = vmatprep.mubr.msk.bf16.mxu1 %vm2465_vm2, %v2464_v4  ;;  %2092 = vmatpush3.bf16.msra.mxu1 %v2625_v53 }
  0x10   :  { %2093 = vmatprep.subr.bf16.mxu1 %v2464_v4 }
  0x13   :  { %2094 = vmatpush3.bf16.msra.mxu1 %v2631_v54 }
  0x14   :  { %2099 = vmatprep.subr.bf16.mxu1 %v2464_v4 }
  0xd9   :  { %v2081_v16 = vpop.f32.mrb[0].mxu1  ;;  %v2077_v21 = vpop.f32.mrb[0].mxu0 }
  0xda   :  { %v2587_v17 = vadd.f32 %v2081_v16, %v74_v14  ;;  %v162_v18 = vpop.f32.mrb[1].mxu1  ;;  %v2593_v23 = vadd.f32 %v2077_v21, %v74_v14  ;;  %v146_v25 = vpop.f32.mrb[1].mxu0 }
  0xdb   :  { %v2589_v19 = vadd.f32 %v162_v18, %v74_v14  ;;  %v2082_v20 = vpop.f32.mrb[2].mxu1  ;;  %v2078_v27 = vpop.f32.mrb[2].mxu0  ;;  %v147_v29 = vadd.f32 %v146_v25, %v74_v14 }
  0xdc   :  { %v2591_v22 = vadd.f32 %v2082_v20, %v74_v14  ;;  %v165_v24 = vpop.f32.mrb[3].mxu1  ;;  %v2601_v30 = vadd.f32 %v2078_v27, %v74_v14  ;;  %v149_v31 = vpop.f32.mrb[3].mxu0 }
  0xdd   :  { %v2595_v26 = vadd.f32 %v165_v24, %v74_v14  ;;  %v2603_v32 = vadd.f32 %v149_v31, %v74_v14 }
  0xe1   :  { %v227_v35 = vpop.f32.mrb[4].mxu1 }
  0xe2   :  { %v233_v36 = vadd.f32 %v227_v35, %v147_v29  ;;  %v2089_v37 = vpop.f32.mrb[5].mxu1 }
  0xe3   :  { %v230_v38 = vpop.f32.mrb[6].mxu1 }
  0xe4   :  { %v234_v39 = vmul.f32 %v233_v36, %v2607_v34  ;;  %v2090_v40 = vpop.f32.mrb[7].mxu1 }
  0xe6   :  { %v1938_v41 = vmul.f32 -1.442695, %v234_v39 }
  0xe8   :  { %2366 = vpow2.f32 %v1938_v41 }
  0xf2   :  { %v2367_v42 = vpop.eup %2366 }
  0xf3   :  { %v238_v43 = vadd.f32 1.0, %v2367_v42 }
  0xf5   :  { %2368 = vrcp.f32 %v238_v43 }
  0xff   :  { %v2369_v44 = vpop.eup %2368 }
 0x100   :  { %v241_v46 = vmul.f32 %v2369_v44, %v2607_v34 }
 0x102   :  { %v242_v47 = vadd.f32 %v241_v46, %v2613_v45 }
 0x104   :  { %245 = vrot.lane.b32.xlu0 %v242_v47, %s2468_s4  ;;  %v243_v50 = vmul.f32 0.0, %v242_v47 }
 0x176   :  { %v246_v48 = vpop.permute.xlu0 %245 }
 0x177   :  { %v248_v49 = vmul.f32 %v246_v48, %v242_v47 }
 0x179   :  { %250 = vrot.lane.b32.xlu0 %v248_v49, %s2469_s12 }
 0x1eb   :  { %v251_v51 = vpop.permute.xlu0 %250 }
 0x1ec   :  { %v2619_v52 = vadd.f32 %v251_v51, %v243_v50 }
 0x1ee   :  { %2370 = vtanh.f32 %v2619_v52 }
 0x1f8   :  { %v2371_v55 = vpop.eup %2370 }
 0x1f9   :  { %256 = vrot.lane.b32.xlu1 %v2371_v55, %s2468_s4 }
 0x26b   :  { %v257_v56 = vpop.permute.xlu1 %256 }
 0x26c   :  { %v259_v57 = vmul.f32 %v257_v56, %v242_v47 }
 0x26e   :  { %v260_v58 = vpack.c.bf16 %v259_v57, %v259_v57 }
 0x270   :  { %266 = vrot.lane.b32.xlu1 %v260_v58, %s2469_s12 }
 0x2e2   :  { %v267_v60 = vpop.permute.xlu1 %266 }
 0x2e3   :  { %2096 = vmatmul.mubr.msk.bf16.vlgmr.msra.gmra.mrb[8].mxu1 %vm189_vm6, %v267_v60  ;;  %2112 = vmatmul.mubr.msk.bf16.vlgmr.msra.gmra.mrb[4].mxu0 %vm189_vm6, %v267_v60 }
 0x2e4   :  { %2100 = vmatpush3.bf16.msra.mxu1 %v2641_v59  ;;  %2103 = vmatprep.mubr.msk.bf16.mxu1 %vm2465_vm2, %v2464_v4 }
 0x2e5   :  { %2101 = vmatprep.subr.bf16.mxu1 %v2464_v4  ;;  %2116 = vmatpush3.bf16.msra.mxu0 %v2625_v53 }
 0x2e6   :  { %2117 = vmatprep.subr.bf16.mxu0 %v2464_v4  ;;  %2119 = vmatprep.mubr.msk.bf16.mxu0 %vm2465_vm2, %v2464_v4 }
 0x2e8   :  { %2102 = vmatpush3.bf16.msra.mxu1 %v2649_v61 }
 0x2e9   :  { %2131 = vmatprep.subr.bf16.mxu1 %v2464_v4  ;;  %2118 = vmatpush3.bf16.msra.mxu0 %v2631_v54 }
 0x2ea   :  { %2123 = vmatprep.subr.bf16.mxu0 %v2464_v4 }
 0x2ef   :  { %2104 = vmatmul.mubr.bf16.vlgmr.msra.gmra.mrb[8].mxu1 %v2466_v9  ;;  %v2675_v9 = vrot.slane %v2582_v13, %v263_v7 }
 0x2f0   :  { %2132 = vmatpush3.bf16.msra.mxu1 %v2544_v5  ;;  %2135 = vmatprep.mubr.msk.bf16.mxu1 %vm2465_vm2, %v2464_v4 }
 0x2f1   :  { %2133 = vmatprep.subr.bf16.mxu1 %v2464_v4 }
 0x2f4   :  { %2134 = vmatpush3.bf16.msra.mxu1 %v2559_v8 }
 0x2f5   :  { %2139 = vmatprep.subr.bf16.mxu1 %v2464_v4 }
 0x3b6   :  { %v436_v62 = vpop.f32.mrb[4].mxu0 }
 0x3b7   :  { %v442_v63 = vadd.f32 %v436_v62, %v2603_v32  ;;  %v2113_v0 = vpop.f32.mrb[5].mxu0 }
 0x3b8   :  { %v439_v1 = vpop.f32.mrb[6].mxu0 }
 0x3b9   :  { %v443_v2 = vmul.f32 %v442_v63, %v2607_v34  ;;  %v2114_v3 = vpop.f32.mrb[7].mxu0 }
 0x3bb   :  { %v1946_v6 = vmul.f32 -1.442695, %v443_v2 }
 0x3bd   :  { %2372 = vpow2.f32 %v1946_v6 }
 0x3c2   :  { %v369_v10 = vpop.f32.mrb[8].mxu1 }
 0x3c3   :  { %v2299_v14 = vadd.f32 %v369_v10, %v2675_v9  ;;  %v2105_v15 = vpop.f32.mrb[9].mxu1 }
 0x3c4   :  { %v372_v16 = vpop.f32.mrb[10].mxu1 }
 0x3c5   :  { %v376_v18 = vmul.f32 %v2299_v14, %v2607_v34  ;;  %v2106_v20 = vpop.f32.mrb[11].mxu1 }
 0x3c7   :  { %v2373_v21 = vpop.eup %2372  ;;  %v1944_v24 = vmul.f32 -1.442695, %v376_v18 }
 0x3c8   :  { %v447_v25 = vadd.f32 1.0, %v2373_v21 }
 0x3c9   :  { %2374 = vpow2.f32 %v1944_v24 }
 0x3ca   :  { %2376 = vrcp.f32 %v447_v25 }
 0x3d3   :  { %v2375_v27 = vpop.eup %2374 }
 0x3d4   :  { %v2377_v28 = vpop.eup %2376  ;;  %v380_v29 = vadd.f32 1.0, %v2375_v27 }
 0x3d5   :  { %v450_v31 = vmul.f32 %v2377_v28, %v2607_v34 }
 0x3d6   :  { %2378 = vrcp.f32 %v380_v29 }
 0x3d7   :  { %v451_v13 = vadd.f32 %v450_v31, %v2613_v45 }
 0x3d9   :  { %454 = vrot.lane.b32.xlu0 %v451_v13, %s2468_s4  ;;  %v452_v40 = vmul.f32 %v451_v13, %v2619_v52 }
 0x3e0   :  { %v2379_v32 = vpop.eup %2378 }
 0x3e1   :  { %v383_v33 = vmul.f32 %v2379_v32, %v2607_v34 }
 0x3e3   :  { %v384_v35 = vadd.f32 %v383_v33, %v2613_v45 }
 0x3e5   :  { %387 = vrot.lane.b32.xlu1 %v384_v35, %s2468_s4  ;;  %v385_v43 = vmul.f32 0.0, %v384_v35 }
 0x44b   :  { %v455_v36 = vpop.permute.xlu0 %454 }
 0x44c   :  { %v457_v37 = vmul.f32 %v455_v36, %v451_v13 }
 0x44e   :  { %459 = vrot.lane.b32.xlu0 %v457_v37, %s2469_s12 }
 0x457   :  { %v388_v38 = vpop.permute.xlu1 %387 }
 0x458   :  { %v390_v39 = vmul.f32 %v388_v38, %v384_v35 }
 0x45a   :  { %392 = vrot.lane.b32.xlu1 %v390_v39, %s2469_s12 }
 0x4c0   :  { %v460_v41 = vpop.permute.xlu0 %459 }
 0x4c1   :  { %v2688_v42 = vadd.f32 %v460_v41, %v452_v40 }
 0x4c3   :  { %2380 = vtanh.f32 %v2688_v42 }
 0x4cc   :  { %v393_v44 = vpop.permute.xlu1 %392 }
 0x4cd   :  { %v2381_v46 = vpop.eup %2380  ;;  %v2691_v47 = vadd.f32 %v393_v44, %v385_v43 }
 0x4ce   :  { %465 = vrot.lane.b32.xlu0 %v2381_v46, %s2468_s4 }
 0x4cf   :  { %2382 = vtanh.f32 %v2691_v47 }
 0x4d9   :  { %v2383_v48 = vpop.eup %2382 }
 0x4da   :  { %398 = vrot.lane.b32.xlu1 %v2383_v48, %s2468_s4 }
 0x540   :  { %v466_v49 = vpop.permute.xlu0 %465 }
 0x541   :  { %v468_v50 = vmul.f32 %v466_v49, %v451_v13 }
 0x543   :  { %v469_v51 = vpack.c.bf16 %v468_v50, %v468_v50 }
 0x545   :  { %471 = vrot.lane.b32.xlu0 %v469_v51, %s2469_s12 }
 0x54c   :  { %v399_v52 = vpop.permute.xlu1 %398 }
 0x54d   :  { %v401_v55 = vmul.f32 %v399_v52, %v384_v35 }
 0x54f   :  { %v516_v56 = vpack.c.bf16 %v401_v55, %v401_v55 }
 0x551   :  { %518 = vrot.lane.b32.xlu1 %v516_v56, %s2469_s12 }
 0x5b7   :  { %v472_v57 = vpop.permute.xlu0 %471 }
 0x5b8   :  { %2120 = vmatmul.mubr.msk.bf16.vlgmr.msra.gmra.mrb[8].mxu0 %vm189_vm6, %v472_v57  ;;  %2136 = vmatmul.mubr.msk.bf16.vlgmr.msra.gmra.mrb[12].mxu1 %vm189_vm6, %v472_v57 }
 0x5b9   :  { %2124 = vmatpush3.bf16.msra.mxu0 %v2641_v59  ;;  %2127 = vmatprep.mubr.msk.bf16.mxu0 %vm2465_vm2, %v2464_v4 }
 0x5ba   :  { %2125 = vmatprep.subr.bf16.mxu0 %v2464_v4  ;;  %2140 = vmatpush3.bf16.msra.mxu1 %v2625_v53 }
 0x5bb   :  { %2141 = vmatprep.subr.bf16.mxu1 %v2464_v4  ;;  %2143 = vmatprep.mubr.msk.bf16.mxu1 %vm2465_vm2, %v2464_v4 }
 0x5bd   :  { %2126 = vmatpush3.bf16.msra.mxu0 %v2649_v61 }
 0x5be   :  { %2155 = vmatprep.subr.bf16.mxu0 %v2464_v4  ;;  %2142 = vmatpush3.bf16.msra.mxu1 %v2631_v54 }
 0x5bf   :  { %2147 = vmatprep.subr.bf16.mxu1 %v2464_v4 }
 0x5c3   :  { %v519_v58 = vpop.permute.xlu1 %518 }
 0x5c4   :  { %2128 = vmatmul.mubr.msk.bf16.vlgmr.msra.gmra.mrb[8].mxu0 %vm189_vm6, %v519_v58 }
 0x5c5   :  { %2156 = vmatpush3.bf16.msra.mxu0 %v2544_v5  ;;  %2159 = vmatprep.mubr.msk.bf16.mxu0 %vm2465_vm2, %v2464_v4 }
 0x5c6   :  { %2157 = vmatprep.subr.bf16.mxu0 %v2464_v4 }
 0x5c9   :  { %2158 = vmatpush3.bf16.msra.mxu0 %v2559_v8 }
 0x5ca   :  { %2163 = vmatprep.subr.bf16.mxu0 %v2464_v4 }
 0x68b   :  { %v624_v60 = vpop.f32.mrb[12].mxu1 }
 0x68c   :  { %v630_v62 = vadd.f32 %v624_v60, %v2593_v23  ;;  %v2137_v63 = vpop.f32.mrb[13].mxu1 }
 0x68d   :  { %v627_v0 = vpop.f32.mrb[14].mxu1 }
 0x68e   :  { %v631_v1 = vmul.f32 %v630_v62, %v2607_v34  ;;  %v2138_v2 = vpop.f32.mrb[15].mxu1 }
 0x690   :  { %v1951_v3 = vmul.f32 -1.442695, %v631_v1 }
 0x692   :  { %2384 = vpow2.f32 %v1951_v3 }
 0x697   :  { %v557_v6 = vpop.f32.mrb[8].mxu0 }
 0x698   :  { %v2300_v10 = vadd.f32 %v557_v6, %v2675_v9  ;;  %v2129_v14 = vpop.f32.mrb[9].mxu0 }
 0x699   :  { %v560_v15 = vpop.f32.mrb[10].mxu0 }
 0x69a   :  { %v564_v16 = vmul.f32 %v2300_v10, %v2607_v34  ;;  %v2130_v18 = vpop.f32.mrb[11].mxu0 }
 0x69c   :  { %v2385_v20 = vpop.eup %2384  ;;  %v1949_v21 = vmul.f32 -1.442695, %v564_v16 }
 0x69d   :  { %v635_v24 = vadd.f32 1.0, %v2385_v20 }
 0x69e   :  { %2386 = vpow2.f32 %v1949_v21 }
 0x69f   :  { %2388 = vrcp.f32 %v635_v24 }
 0x6a8   :  { %v2387_v23 = vpop.eup %2386 }
 0x6a9   :  { %v2389_v25 = vpop.eup %2388  ;;  %v568_v27 = vadd.f32 1.0, %v2387_v23 }
 0x6aa   :  { %v638_v28 = vmul.f32 %v2389_v25, %v2607_v34 }
 0x6ab   :  { %2390 = vrcp.f32 %v568_v27 }
 0x6ac   :  { %v639_v29 = vadd.f32 %v638_v28, %v2613_v45 }
 0x6ae   :  { %642 = vrot.lane.b32.xlu0 %v639_v29, %s2468_s4  ;;  %v640_v38 = vmul.f32 %v639_v29, %v2688_v42 }
 0x6b5   :  { %v2391_v31 = vpop.eup %2390 }
 0x6b6   :  { %v571_v13 = vmul.f32 %v2391_v31, %v2607_v34 }
 0x6b8   :  { %v572_v32 = vadd.f32 %v571_v13, %v2613_v45 }
 0x6ba   :  { %575 = vrot.lane.b32.xlu1 %v572_v32, %s2468_s4  ;;  %v573_v41 = vmul.f32 %v572_v32, %v2691_v47 }
 0x720   :  { %v643_v33 = vpop.permute.xlu0 %642 }
 0x721   :  { %v645_v35 = vmul.f32 %v643_v33, %v639_v29 }
 0x723   :  { %647 = vrot.lane.b32.xlu0 %v645_v35, %s2469_s12 }
 0x72c   :  { %v576_v36 = vpop.permute.xlu1 %575 }
 0x72d   :  { %v578_v37 = vmul.f32 %v576_v36, %v572_v32 }
 0x72f   :  { %580 = vrot.lane.b32.xlu1 %v578_v37, %s2469_s12 }
 0x795   :  { %v648_v39 = vpop.permute.xlu0 %647 }
 0x796   :  { %v2732_v40 = vadd.f32 %v648_v39, %v640_v38 }
 0x798   :  { %2392 = vtanh.f32 %v2732_v40 }
 0x7a1   :  { %v581_v43 = vpop.permute.xlu1 %580 }
 0x7a2   :  { %v2393_v44 = vpop.eup %2392  ;;  %v2736_v46 = vadd.f32 %v581_v43, %v573_v41 }
 0x7a3   :  { %653 = vrot.lane.b32.xlu0 %v2393_v44, %s2468_s4 }
 0x7a4   :  { %2394 = vtanh.f32 %v2736_v46 }
 0x7ae   :  { %v2395_v48 = vpop.eup %2394 }
 0x7af   :  { %586 = vrot.lane.b32.xlu1 %v2395_v48, %s2468_s4 }
 0x815   :  { %v654_v49 = vpop.permute.xlu0 %653 }
 0x816   :  { %v656_v42 = vmul.f32 %v654_v49, %v639_v29 }
 0x818   :  { %v657_v50 = vpack.c.bf16 %v656_v42, %v656_v42 }
 0x81a   :  { %659 = vrot.lane.b32.xlu0 %v657_v50, %s2469_s12 }
 0x821   :  { %v587_v51 = vpop.permute.xlu1 %586 }
 0x822   :  { %v589_v52 = vmul.f32 %v587_v51, %v572_v32 }
 0x824   :  { %v704_v55 = vpack.c.bf16 %v589_v52, %v589_v52 }
 0x826   :  { %706 = vrot.lane.b32.xlu1 %v704_v55, %s2469_s12 }
 0x88c   :  { %v660_v47 = vpop.permute.xlu0 %659 }
 0x88d   :  { %2144 = vmatmul.mubr.msk.bf16.vlgmr.msra.gmra.mrb[16].mxu1 %vm189_vm6, %v660_v47  ;;  %2160 = vmatmul.mubr.msk.bf16.vlgmr.msra.gmra.mrb[12].mxu0 %vm189_vm6, %v660_v47 }
 0x88e   :  { %2148 = vmatpush3.bf16.msra.mxu1 %v2641_v59  ;;  %2151 = vmatprep.mubr.msk.bf16.mxu1 %vm2465_vm2, %v2464_v4 }
 0x88f   :  { %2149 = vmatprep.subr.bf16.mxu1 %v2464_v4  ;;  %2164 = vmatpush3.bf16.msra.mxu0 %v2625_v53 }
 0x890   :  { %2165 = vmatprep.subr.bf16.mxu0 %v2464_v4  ;;  %2167 = vmatprep.mubr.msk.bf16.mxu0 %vm2465_vm2, %v2464_v4 }
 0x892   :  { %2150 = vmatpush3.bf16.msra.mxu1 %v2649_v61 }
 0x893   :  { %2179 = vmatprep.subr.bf16.mxu1 %v2464_v4  ;;  %2166 = vmatpush3.bf16.msra.mxu0 %v2631_v54 }
 0x894   :  { %2171 = vmatprep.subr.bf16.mxu0 %v2464_v4 }
 0x898   :  { %v707_v56 = vpop.permute.xlu1 %706 }
 0x899   :  { %2152 = vmatmul.mubr.msk.bf16.vlgmr.msra.gmra.mrb[16].mxu1 %vm189_vm6, %v707_v56 }
 0x89a   :  { %2180 = vmatpush3.bf16.msra.mxu1 %v2544_v5  ;;  %2183 = vmatprep.mubr.msk.bf16.mxu1 %vm2465_vm2, %v2464_v4 }
 0x89b   :  { %2181 = vmatprep.subr.bf16.mxu1 %v2464_v4 }
 0x89e   :  { %2182 = vmatpush3.bf16.msra.mxu1 %v2559_v8 }
 0x89f   :  { %2187 = vmatprep.subr.bf16.mxu1 %v2464_v4 }
 0x960   :  { %v812_v57 = vpop.f32.mrb[12].mxu0 }
 0x961   :  { %v818_v58 = vadd.f32 %v812_v57, %v2601_v30  ;;  %v2161_v60 = vpop.f32.mrb[13].mxu0 }
 0x962   :  { %v815_v62 = vpop.f32.mrb[14].mxu0 }
 0x963   :  { %v819_v63 = vmul.f32 %v818_v58, %v2607_v34  ;;  %v2162_v0 = vpop.f32.mrb[15].mxu0 }
 0x965   :  { %v1956_v1 = vmul.f32 -1.442695, %v819_v63 }
 0x967   :  { %2396 = vpow2.f32 %v1956_v1 }
 0x96c   :  { %v745_v2 = vpop.f32.mrb[16].mxu1 }
 0x96d   :  { %v2301_v3 = vadd.f32 %v745_v2, %v2675_v9  ;;  %v2153_v6 = vpop.f32.mrb[17].mxu1 }
 0x96e   :  { %v748_v10 = vpop.f32.mrb[18].mxu1 }
 0x96f   :  { %v752_v14 = vmul.f32 %v2301_v3, %v2607_v34  ;;  %v2154_v15 = vpop.f32.mrb[19].mxu1 }
 0x971   :  { %v2397_v16 = vpop.eup %2396  ;;  %v1954_v18 = vmul.f32 -1.442695, %v752_v14 }
 0x972   :  { %v823_v20 = vadd.f32 1.0, %v2397_v16 }
 0x973   :  { %2398 = vpow2.f32 %v1954_v18 }
 0x974   :  { %2400 = vrcp.f32 %v823_v20 }
 0x97d   :  { %v2399_v30 = vpop.eup %2398 }
 0x97e   :  { %v2401_v21 = vpop.eup %2400  ;;  %v756_v24 = vadd.f32 1.0, %v2399_v30 }
 0x97f   :  { %v826_v23 = vmul.f32 %v2401_v21, %v2607_v34 }
 0x980   :  { %2402 = vrcp.f32 %v756_v24 }
 0x981   :  { %v827_v25 = vadd.f32 %v826_v23, %v2613_v45 }
 0x983   :  { %830 = vrot.lane.b32.xlu0 %v827_v25, %s2468_s4  ;;  %v828_v35 = vmul.f32 %v827_v25, %v2732_v40 }
 0x98a   :  { %v2403_v27 = vpop.eup %2402 }
 0x98b   :  { %v759_v28 = vmul.f32 %v2403_v27, %v2607_v34 }
 0x98d   :  { %v760_v29 = vadd.f32 %v759_v28, %v2613_v45 }
 0x98f   :  { %763 = vrot.lane.b32.xlu1 %v760_v29, %s2468_s4  ;;  %v761_v38 = vmul.f32 %v760_v29, %v2736_v46 }
 0x9f5   :  { %v831_v31 = vpop.permute.xlu0 %830 }
 0x9f6   :  { %v833_v13 = vmul.f32 %v831_v31, %v827_v25 }
 0x9f8   :  { %835 = vrot.lane.b32.xlu0 %v833_v13, %s2469_s12 }
 0xa01   :  { %v764_v32 = vpop.permute.xlu1 %763 }
 0xa02   :  { %v766_v33 = vmul.f32 %v764_v32, %v760_v29 }
 0xa04   :  { %768 = vrot.lane.b32.xlu1 %v766_v33, %s2469_s12 }
 0xa6a   :  { %v836_v36 = vpop.permute.xlu0 %835 }
 0xa6b   :  { %v2777_v37 = vadd.f32 %v836_v36, %v828_v35 }
 0xa6d   :  { %2404 = vtanh.f32 %v2777_v37 }
 0xa76   :  { %v769_v39 = vpop.permute.xlu1 %768 }
 0xa77   :  { %v2405_v41 = vpop.eup %2404  ;;  %v2781_v43 = vadd.f32 %v769_v39, %v761_v38 }
 0xa78   :  { %841 = vrot.lane.b32.xlu0 %v2405_v41, %s2468_s4 }
 0xa79   :  { %2406 = vtanh.f32 %v2781_v43 }
 0xa83   :  { %v2407_v44 = vpop.eup %2406 }
 0xa84   :  { %774 = vrot.lane.b32.xlu1 %v2407_v44, %s2468_s4 }
 0xaea   :  { %v842_v48 = vpop.permute.xlu0 %841 }
 0xaeb   :  { %v844_v40 = vmul.f32 %v842_v48, %v827_v25 }
 0xaed   :  { %v845_v49 = vpack.c.bf16 %v844_v40, %v844_v40 }
 0xaef   :  { %847 = vrot.lane.b32.xlu0 %v845_v49, %s2469_s12 }
 0xaf6   :  { %v775_v42 = vpop.permute.xlu1 %774 }
 0xaf7   :  { %v777_v50 = vmul.f32 %v775_v42, %v760_v29 }
 0xaf9   :  { %v892_v51 = vpack.c.bf16 %v777_v50, %v777_v50 }
 0xafb   :  { %894 = vrot.lane.b32.xlu1 %v892_v51, %s2469_s12 }
 0xb61   :  { %v848_v46 = vpop.permute.xlu0 %847 }
 0xb62   :  { %2168 = vmatmul.mubr.msk.bf16.vlgmr.msra.gmra.mrb[16].mxu0 %vm189_vm6, %v848_v46  ;;  %2184 = vmatmul.mubr.msk.bf16.vlgmr.msra.gmra.mrb[20].mxu1 %vm189_vm6, %v848_v46 }
 0xb63   :  { %2172 = vmatpush3.bf16.msra.mxu0 %v2641_v59  ;;  %2175 = vmatprep.mubr.msk.bf16.mxu0 %vm2465_vm2, %v2464_v4 }
 0xb64   :  { %2173 = vmatprep.subr.bf16.mxu0 %v2464_v4  ;;  %2188 = vmatpush3.bf16.msra.mxu1 %v2625_v53 }
 0xb65   :  { %2189 = vmatprep.subr.bf16.mxu1 %v2464_v4  ;;  %2191 = vmatprep.mubr.msk.bf16.mxu1 %vm2465_vm2, %v2464_v4 }
 0xb67   :  { %2174 = vmatpush3.bf16.msra.mxu0 %v2649_v61 }
 0xb68   :  { %2203 = vmatprep.subr.bf16.mxu0 %v2464_v4  ;;  %2190 = vmatpush3.bf16.msra.mxu1 %v2631_v54 }
 0xb69   :  { %2195 = vmatprep.subr.bf16.mxu1 %v2464_v4 }
 0xb6d   :  { %v895_v52 = vpop.permute.xlu1 %894 }
 0xb6e   :  { %2176 = vmatmul.mubr.msk.bf16.vlgmr.msra.gmra.mrb[16].mxu0 %vm189_vm6, %v895_v52 }
 0xb6f   :  { %2204 = vmatpush3.bf16.msra.mxu0 %v2544_v5  ;;  %2207 = vmatprep.mubr.msk.bf16.mxu0 %vm2465_vm2, %v2464_v4 }
 0xb70   :  { %2205 = vmatprep.subr.bf16.mxu0 %v2464_v4 }
 0xb73   :  { %2206 = vmatpush3.bf16.msra.mxu0 %v2559_v8 }
 0xb74   :  { %2211 = vmatprep.subr.bf16.mxu0 %v2464_v4 }
 0xc35   :  { %v1000_v55 = vpop.f32.mrb[20].mxu1 }
 0xc36   :  { %v1006_v47 = vadd.f32 %v1000_v55, %v2589_v19  ;;  %v2185_v56 = vpop.f32.mrb[21].mxu1 }
 0xc37   :  { %v1003_v57 = vpop.f32.mrb[22].mxu1 }
 0xc38   :  { %v1007_v58 = vmul.f32 %v1006_v47, %v2607_v34  ;;  %v2186_v60 = vpop.f32.mrb[23].mxu1 }
 0xc3a   :  { %v1961_v62 = vmul.f32 -1.442695, %v1007_v58 }
 0xc3c   :  { %2408 = vpow2.f32 %v1961_v62 }
 0xc41   :  { %v933_v63 = vpop.f32.mrb[16].mxu0 }
 0xc42   :  { %v2302_v0 = vadd.f32 %v933_v63, %v2675_v9  ;;  %v2177_v1 = vpop.f32.mrb[17].mxu0 }
 0xc43   :  { %v936_v2 = vpop.f32.mrb[18].mxu0 }
 0xc44   :  { %v940_v3 = vmul.f32 %v2302_v0, %v2607_v34  ;;  %v2178_v6 = vpop.f32.mrb[19].mxu0 }
 0xc46   :  { %v2409_v10 = vpop.eup %2408  ;;  %v1959_v14 = vmul.f32 -1.442695, %v940_v3 }
 0xc47   :  { %v1011_v15 = vadd.f32 1.0, %v2409_v10 }
 0xc48   :  { %2410 = vpow2.f32 %v1959_v14 }
 0xc49   :  { %2412 = vrcp.f32 %v1011_v15 }
 0xc52   :  { %v2411_v19 = vpop.eup %2410 }
 0xc53   :  { %v2413_v16 = vpop.eup %2412  ;;  %v944_v18 = vadd.f32 1.0, %v2411_v19 }
 0xc54   :  { %v1014_v20 = vmul.f32 %v2413_v16, %v2607_v34 }
 0xc55   :  { %2414 = vrcp.f32 %v944_v18 }
 0xc56   :  { %v1015_v30 = vadd.f32 %v1014_v20, %v2613_v45 }
 0xc58   :  { %1018 = vrot.lane.b32.xlu0 %v1015_v30, %s2468_s4  ;;  %v1016_v31 = vmul.f32 %v1015_v30, %v2777_v37 }
 0xc5f   :  { %v2415_v21 = vpop.eup %2414 }
 0xc60   :  { %v947_v24 = vmul.f32 %v2415_v21, %v2607_v34 }
 0xc62   :  { %v948_v23 = vadd.f32 %v947_v24, %v2613_v45 }
 0xc64   :  { %951 = vrot.lane.b32.xlu1 %v948_v23, %s2468_s4  ;;  %v949_v33 = vmul.f32 %v948_v23, %v2781_v43 }
 0xcca   :  { %v1019_v25 = vpop.permute.xlu0 %1018 }
 0xccb   :  { %v1021_v27 = vmul.f32 %v1019_v25, %v1015_v30 }
 0xccd   :  { %1023 = vrot.lane.b32.xlu0 %v1021_v27, %s2469_s12 }
 0xcd6   :  { %v952_v28 = vpop.permute.xlu1 %951 }
 0xcd7   :  { %v954_v29 = vmul.f32 %v952_v28, %v948_v23 }
 0xcd9   :  { %956 = vrot.lane.b32.xlu1 %v954_v29, %s2469_s12 }
 0xd3f   :  { %v1024_v13 = vpop.permute.xlu0 %1023 }
 0xd40   :  { %v2822_v32 = vadd.f32 %v1024_v13, %v1016_v31 }
 0xd42   :  { %2416 = vtanh.f32 %v2822_v32 }
 0xd4b   :  { %v957_v35 = vpop.permute.xlu1 %956 }
 0xd4c   :  { %v2417_v36 = vpop.eup %2416  ;;  %v2826_v38 = vadd.f32 %v957_v35, %v949_v33 }
 0xd4d   :  { %1029 = vrot.lane.b32.xlu0 %v2417_v36, %s2468_s4 }
 0xd4e   :  { %2418 = vtanh.f32 %v2826_v38 }
 0xd58   :  { %v2419_v39 = vpop.eup %2418 }
 0xd59   :  { %962 = vrot.lane.b32.xlu1 %v2419_v39, %s2468_s4 }
 0xdbf   :  { %v1030_v41 = vpop.permute.xlu0 %1029 }
 0xdc0   :  { %v1032_v37 = vmul.f32 %v1030_v41, %v1015_v30 }
 0xdc2   :  { %v1033_v44 = vpack.c.bf16 %v1032_v37, %v1032_v37 }
 0xdc4   :  { %1035 = vrot.lane.b32.xlu0 %v1033_v44, %s2469_s12 }
 0xdcb   :  { %v963_v48 = vpop.permute.xlu1 %962 }
 0xdcc   :  { %v965_v40 = vmul.f32 %v963_v48, %v948_v23 }
 0xdce   :  { %v1080_v49 = vpack.c.bf16 %v965_v40, %v965_v40 }
 0xdd0   :  { %1082 = vrot.lane.b32.xlu1 %v1080_v49, %s2469_s12 }
 0xe36   :  { %v1036_v43 = vpop.permute.xlu0 %1035 }
 0xe37   :  { %2192 = vmatmul.mubr.msk.bf16.vlgmr.msra.gmra.mrb[24].mxu1 %vm189_vm6, %v1036_v43  ;;  %2208 = vmatmul.mubr.msk.bf16.vlgmr.msra.gmra.mrb[20].mxu0 %vm189_vm6, %v1036_v43 }
 0xe38   :  { %2196 = vmatpush3.bf16.msra.mxu1 %v2641_v59  ;;  %2199 = vmatprep.mubr.msk.bf16.mxu1 %vm2465_vm2, %v2464_v4 }
 0xe39   :  { %2197 = vmatprep.subr.bf16.mxu1 %v2464_v4  ;;  %2212 = vmatpush3.bf16.msra.mxu0 %v2625_v53 }
 0xe3a   :  { %2213 = vmatprep.subr.bf16.mxu0 %v2464_v4  ;;  %2215 = vmatprep.mubr.msk.bf16.mxu0 %vm2465_vm2, %v2464_v4 }
 0xe3c   :  { %2198 = vmatpush3.bf16.msra.mxu1 %v2649_v61 }
 0xe3d   :  { %2227 = vmatprep.subr.bf16.mxu1 %v2464_v4  ;;  %2214 = vmatpush3.bf16.msra.mxu0 %v2631_v54 }
 0xe3e   :  { %2219 = vmatprep.subr.bf16.mxu0 %v2464_v4 }
 0xe42   :  { %v1083_v42 = vpop.permute.xlu1 %1082 }
 0xe43   :  { %2200 = vmatmul.mubr.msk.bf16.vlgmr.msra.gmra.mrb[24].mxu1 %vm189_vm6, %v1083_v42 }
 0xe44   :  { %2228 = vmatpush3.bf16.msra.mxu1 %v2544_v5  ;;  %2231 = vmatprep.mubr.msk.bf16.mxu1 %vm2465_vm2, %v2464_v4 }
 0xe45   :  { %2229 = vmatprep.subr.bf16.mxu1 %v2464_v4 }
 0xe48   :  { %2230 = vmatpush3.bf16.msra.mxu1 %v2559_v8 }
 0xe49   :  { %2235 = vmatprep.subr.bf16.mxu1 %v2464_v4 }
 0xf0a   :  { %v1188_v50 = vpop.f32.mrb[20].mxu0 }
 0xf0b   :  { %v1194_v51 = vadd.f32 %v1188_v50, %v2595_v26  ;;  %v2209_v46 = vpop.f32.mrb[21].mxu0 }
 0xf0c   :  { %v1191_v52 = vpop.f32.mrb[22].mxu0 }
 0xf0d   :  { %v1195_v55 = vmul.f32 %v1194_v51, %v2607_v34  ;;  %v2210_v47 = vpop.f32.mrb[23].mxu0 }
 0xf0f   :  { %v1966_v56 = vmul.f32 -1.442695, %v1195_v55 }
 0xf11   :  { %2420 = vpow2.f32 %v1966_v56 }
 0xf16   :  { %v1121_v57 = vpop.f32.mrb[24].mxu1 }
 0xf17   :  { %v2303_v58 = vadd.f32 %v1121_v57, %v2675_v9  ;;  %v2201_v60 = vpop.f32.mrb[25].mxu1 }
 0xf18   :  { %v1124_v62 = vpop.f32.mrb[26].mxu1 }
 0xf19   :  { %v1128_v63 = vmul.f32 %v2303_v58, %v2607_v34  ;;  %v2202_v0 = vpop.f32.mrb[27].mxu1 }
 0xf1b   :  { %v2421_v1 = vpop.eup %2420  ;;  %v1964_v2 = vmul.f32 -1.442695, %v1128_v63 }
 0xf1c   :  { %v1199_v3 = vadd.f32 1.0, %v2421_v1 }
 0xf1d   :  { %2422 = vpow2.f32 %v1964_v2 }
 0xf1e   :  { %2424 = vrcp.f32 %v1199_v3 }
 0xf27   :  { %v2423_v26 = vpop.eup %2422 }
 0xf28   :  { %v2425_v6 = vpop.eup %2424  ;;  %v1132_v10 = vadd.f32 1.0, %v2423_v26 }
 0xf29   :  { %v1202_v14 = vmul.f32 %v2425_v6, %v2607_v34 }
 0xf2a   :  { %2426 = vrcp.f32 %v1132_v10 }
 0xf2b   :  { %v1203_v15 = vadd.f32 %v1202_v14, %v2613_v45 }
 0xf2d   :  { %1206 = vrot.lane.b32.xlu0 %v1203_v15, %s2468_s4  ;;  %v1204_v23 = vmul.f32 %v1203_v15, %v2822_v32 }
 0xf34   :  { %v2427_v19 = vpop.eup %2426 }
 0xf35   :  { %v1135_v16 = vmul.f32 %v2427_v19, %v2607_v34 }
 0xf37   :  { %v1136_v18 = vadd.f32 %v1135_v16, %v2613_v45 }
 0xf39   :  { %1139 = vrot.lane.b32.xlu1 %v1136_v18, %s2468_s4  ;;  %v1137_v28 = vmul.f32 %v1136_v18, %v2826_v38 }
 0xf9f   :  { %v1207_v20 = vpop.permute.xlu0 %1206 }
 0xfa0   :  { %v1209_v30 = vmul.f32 %v1207_v20, %v1203_v15 }
 0xfa2   :  { %1211 = vrot.lane.b32.xlu0 %v1209_v30, %s2469_s12 }
 0xfab   :  { %v1140_v21 = vpop.permute.xlu1 %1139 }
 0xfac   :  { %v1142_v24 = vmul.f32 %v1140_v21, %v1136_v18 }
 0xfae   :  { %1144 = vrot.lane.b32.xlu1 %v1142_v24, %s2469_s12 }
0x1014   :  { %v1212_v25 = vpop.permute.xlu0 %1211 }
0x1015   :  { %v2867_v27 = vadd.f32 %v1212_v25, %v1204_v23 }
0x1017   :  { %2428 = vtanh.f32 %v2867_v27 }
0x1020   :  { %v1145_v29 = vpop.permute.xlu1 %1144 }
0x1021   :  { %v2429_v31 = vpop.eup %2428  ;;  %v2871_v13 = vadd.f32 %v1145_v29, %v1137_v28 }
0x1022   :  { %1217 = vrot.lane.b32.xlu0 %v2429_v31, %s2468_s4 }
0x1023   :  { %2430 = vtanh.f32 %v2871_v13 }
0x102d   :  { %v2431_v33 = vpop.eup %2430 }
0x102e   :  { %1150 = vrot.lane.b32.xlu1 %v2431_v33, %s2468_s4 }
0x1094   :  { %v1218_v35 = vpop.permute.xlu0 %1217 }
0x1095   :  { %v1220_v32 = vmul.f32 %v1218_v35, %v1203_v15 }
0x1097   :  { %v1221_v36 = vpack.c.bf16 %v1220_v32, %v1220_v32 }
0x1099   :  { %1223 = vrot.lane.b32.xlu0 %v1221_v36, %s2469_s12 }
0x10a0   :  { %v1151_v39 = vpop.permute.xlu1 %1150 }
0x10a1   :  { %v1153_v41 = vmul.f32 %v1151_v39, %v1136_v18 }
0x10a3   :  { %v1268_v37 = vpack.c.bf16 %v1153_v41, %v1153_v41 }
0x10a5   :  { %1270 = vrot.lane.b32.xlu1 %v1268_v37, %s2469_s12 }
0x110b   :  { %v1224_v38 = vpop.permute.xlu0 %1223 }
0x110c   :  { %2216 = vmatmul.mubr.msk.bf16.vlgmr.msra.gmra.mrb[24].mxu0 %vm189_vm6, %v1224_v38  ;;  %2232 = vmatmul.mubr.msk.bf16.vlgmr.msra.gmra.mrb[28].mxu1 %vm189_vm6, %v1224_v38 }
0x110d   :  { %2220 = vmatpush3.bf16.msra.mxu0 %v2641_v59  ;;  %2223 = vmatprep.mubr.msk.bf16.mxu0 %vm2465_vm2, %v2464_v4 }
0x110e   :  { %2221 = vmatprep.subr.bf16.mxu0 %v2464_v4  ;;  %2236 = vmatpush3.bf16.msra.mxu1 %v2625_v53 }
0x110f   :  { %2237 = vmatprep.subr.bf16.mxu1 %v2464_v4  ;;  %2239 = vmatprep.mubr.msk.bf16.mxu1 %vm2465_vm2, %v2464_v4 }
0x1111   :  { %2222 = vmatpush3.bf16.msra.mxu0 %v2649_v61 }
0x1112   :  { %2251 = vmatprep.subr.bf16.mxu0 %v2464_v4  ;;  %2238 = vmatpush3.bf16.msra.mxu1 %v2631_v54 }
0x1113   :  { %2243 = vmatprep.subr.bf16.mxu1 %v2464_v4 }
0x1117   :  { %v1271_v44 = vpop.permute.xlu1 %1270 }
0x1118   :  { %2224 = vmatmul.mubr.msk.bf16.vlgmr.msra.gmra.mrb[24].mxu0 %vm189_vm6, %v1271_v44 }
0x1119   :  { %2252 = vmatpush3.bf16.msra.mxu0 %v2544_v5  ;;  %2255 = vmatprep.mubr.msk.bf16.mxu0 %vm2465_vm2, %v2464_v4 }
0x111a   :  { %2253 = vmatprep.subr.bf16.mxu0 %v2464_v4 }
0x111d   :  { %2254 = vmatpush3.bf16.msra.mxu0 %v2559_v8 }
0x111e   :  { %2259 = vmatprep.subr.bf16.mxu0 %v2464_v4 }
0x11df   :  { %v1376_v48 = vpop.f32.mrb[28].mxu1 }
0x11e0   :  { %v1382_v40 = vadd.f32 %v1376_v48, %v2587_v17  ;;  %v2233_v49 = vpop.f32.mrb[29].mxu1 }
0x11e1   :  { %v1379_v43 = vpop.f32.mrb[30].mxu1 }
0x11e2   :  { %v1383_v42 = vmul.f32 %v1382_v40, %v2607_v34  ;;  %v2234_v50 = vpop.f32.mrb[31].mxu1 }
0x11e4   :  { %v1971_v51 = vmul.f32 -1.442695, %v1383_v42 }
0x11e6   :  { %2432 = vpow2.f32 %v1971_v51 }
0x11eb   :  { %v1309_v5 = vpop.f32.mrb[24].mxu0 }
0x11ec   :  { %v2304_v46 = vadd.f32 %v1309_v5, %v2675_v9  ;;  %v2225_v52 = vpop.f32.mrb[25].mxu0 }
0x11ed   :  { %v1312_v55 = vpop.f32.mrb[26].mxu0 }
0x11ee   :  { %v1316_v47 = vmul.f32 %v2304_v46, %v2607_v34  ;;  %v2226_v8 = vpop.f32.mrb[27].mxu0 }
0x11f0   :  { %v2433_v56 = vpop.eup %2432  ;;  %v1969_v57 = vmul.f32 -1.442695, %v1316_v47 }
0x11f1   :  { %v1387_v58 = vadd.f32 1.0, %v2433_v56 }
0x11f2   :  { %2434 = vpow2.f32 %v1969_v57 }
0x11f3   :  { %2436 = vrcp.f32 %v1387_v58 }
0x11fc   :  { %v2435_v17 = vpop.eup %2434 }
0x11fd   :  { %v2437_v60 = vpop.eup %2436  ;;  %v1320_v62 = vadd.f32 1.0, %v2435_v17 }
0x11fe   :  { %v1390_v63 = vmul.f32 %v2437_v60, %v2607_v34 }
0x11ff   :  { %2438 = vrcp.f32 %v1320_v62 }
0x1200   :  { %v1391_v0 = vadd.f32 %v1390_v63, %v2613_v45 }
0x1202   :  { %1394 = vrot.lane.b32.xlu0 %v1391_v0, %s2468_s4  ;;  %v1392_v15 = vmul.f32 %v1391_v0, %v2867_v27 }
0x1209   :  { %v2439_v1 = vpop.eup %2438 }
0x120a   :  { %v1323_v2 = vmul.f32 %v2439_v1, %v2607_v34 }
0x120c   :  { %v1324_v3 = vadd.f32 %v1323_v2, %v2613_v45 }
0x120e   :  { %1327 = vrot.lane.b32.xlu1 %v1324_v3, %s2468_s4  ;;  %v1325_v18 = vmul.f32 %v1324_v3, %v2871_v13 }
0x1274   :  { %v1395_v26 = vpop.permute.xlu0 %1394 }
0x1275   :  { %v1397_v6 = vmul.f32 %v1395_v26, %v1391_v0 }
0x1277   :  { %1399 = vrot.lane.b32.xlu0 %v1397_v6, %s2469_s12 }
0x1280   :  { %v1328_v10 = vpop.permute.xlu1 %1327 }
0x1281   :  { %v1330_v14 = vmul.f32 %v1328_v10, %v1324_v3  ;;  %v1721_v10 = vld [vmem:[%s3026_s6] sm:$0x7] }
0x1283   :  { %1332 = vrot.lane.b32.xlu1 %v1330_v14, %s2469_s12  ;;  %v1719_v14 = vld [vmem:[%s3027_s5] sm:$0xff] }
0x12e9   :  { %v1400_v19 = vpop.permute.xlu0 %1399 }
0x12ea   :  { %v2912_v16 = vadd.f32 %v1400_v19, %v1392_v15  ;;  %v1732_v15 = vsel %vm1730_vm7, %v1721_v10, 0  ;;  %v1720_v19 = vpack.c.bf16 %v1719_v14, %v1719_v14 }
0x12ec   :  { %2440 = vtanh.f32 %v2912_v16 }
0x12f5   :  { %v1333_v20 = vpop.permute.xlu1 %1332 }
0x12f6   :  { %v2441_v30 = vpop.eup %2440  ;;  %v2916_v21 = vadd.f32 %v1333_v20, %v1325_v18 }
0x12f7   :  { %1405 = vrot.lane.b32.xlu0 %v2441_v30, %s2468_s4 }
0x12f8   :  { %2442 = vtanh.f32 %v2916_v21 }
0x1302   :  { %v2443_v24 = vpop.eup %2442 }
0x1303   :  { %1338 = vrot.lane.b32.xlu1 %v2443_v24, %s2468_s4  ;;  %v2463_v24 = vld [vmem:[%s3023_s3 + $0x18] sm:$0xff]  }
0x1369   :  { %v1406_v23 = vpop.permute.xlu0 %1405 }
0x136a   :  { %v1408_v25 = vmul.f32 %v1406_v23, %v1391_v0 }
0x136c   :  { %v1409_v27 = vpack.c.bf16 %v1408_v25, %v1408_v25 }
0x136e   :  { %1411 = vrot.lane.b32.xlu0 %v1409_v27, %s2469_s12 }
0x1375   :  { %v1339_v28 = vpop.permute.xlu1 %1338 }
0x1376   :  { %v1341_v29 = vmul.f32 %v1339_v28, %v1324_v3 }
0x1378   :  { %v1456_v31 = vpack.c.bf16 %v1341_v29, %v1341_v29 }
0x137a   :  { %1458 = vrot.lane.b32.xlu1 %v1456_v31, %s2469_s12 }
0x13e0   :  { %v1412_v13 = vpop.permute.xlu0 %1411 }
0x13e1   :  { %2240 = vmatmul.mubr.msk.bf16.vlgmr.msra.gmra.mrb[32].mxu1 %vm189_vm6, %v1412_v13  ;;  %2256 = vmatmul.mubr.msk.bf16.vlgmr.msra.gmra.mrb[28].mxu0 %vm189_vm6, %v1412_v13 }
0x13e2   :  { %2244 = vmatpush3.bf16.msra.mxu1 %v2641_v59  ;;  %2247 = vmatprep.mubr.msk.bf16.mxu1 %vm2465_vm2, %v2464_v4 }
0x13e3   :  { %2245 = vmatprep.subr.bf16.mxu1 %v2464_v4  ;;  %2260 = vmatpush3.bf16.msra.mxu0 %v2625_v53 }
0x13e4   :  { %2261 = vmatprep.subr.bf16.mxu0 %v2464_v4  ;;  %2263 = vmatprep.mubr.msk.bf16.mxu0 %vm2465_vm2, %v2464_v4 }
0x13e6   :  { %2246 = vmatpush3.bf16.msra.mxu1 %v2649_v61 }
0x13e7   :  { %2262 = vmatpush3.bf16.msra.mxu0 %v2631_v54  ;;  %2275 = vmatprep.subr.bf16.mxu1 %v2464_v4 }
0x13e8   :  { %2267 = vmatprep.subr.bf16.mxu0 %v2464_v4 }
0x13ec   :  { %v1459_v59 = vpop.permute.xlu1 %1458 }
0x13ed   :  { %2248 = vmatmul.mubr.msk.bf16.vlgmr.msra.gmra.mrb[32].mxu1 %vm189_vm6, %v1459_v59 }
0x13ee   :  { %2277 = vmatprep.mubr.msk.bf16.mxu1 %vm2465_vm2, %v2464_v4  ;;  %2276 = vmatpush3.bf16.msra.mxu1 %v1732_v15 }
0x13ef   :  { %2281 = vmatprep.subr.bf16.mxu1 %v2464_v4 }
0x13f5   :  { %2278 = vmatmul.mubr.msk.bf16.vlgmr.msra.gmra.mrb[36].mxu1 %vm1726_vm8, %v1720_v19 }
0x13f6   :  { %2283 = vmatprep.mubr.msk.bf16.mxu1 %vm2465_vm2, %v2464_v4 }
0x14b4   :  { %v1564_v53 = vpop.f32.mrb[28].mxu0 }
0x14b5   :  { %v1570_v33 = vadd.f32 %v1564_v53, %v2591_v22  ;;  %v2257_v35 = vpop.f32.mrb[29].mxu0 }
0x14b6   :  { %v1567_v32 = vpop.f32.mrb[30].mxu0 }
0x14b7   :  { %v1571_v36 = vmul.f32 %v1570_v33, %v2607_v34  ;;  %v2258_v61 = vpop.f32.mrb[31].mxu0  ;;  %v1718_v32 = vld [vmem:[%s3028_s8] sm:$0x3] }
0x14b8   :  { %v1725_v61 = vrot.slane %v1718_v32, %v73_v12 }
0x14b9   :  { %v1976_v39 = vmul.f32 -1.442695, %v1571_v36 }
0x14bb   :  { %2444 = vpow2.f32 %v1976_v39 }
0x14c0   :  { %v1497_v54 = vpop.f32.mrb[32].mxu1 }
0x14c1   :  { %v2305_v41 = vadd.f32 %v1497_v54, %v2675_v9  ;;  %v2249_v37 = vpop.f32.mrb[33].mxu1 }
0x14c2   :  { %v1500_v38 = vpop.f32.mrb[34].mxu1 }
0x14c3   :  { %v1504_v44 = vmul.f32 %v2305_v41, %v2607_v34  ;;  %v2250_v48 = vpop.f32.mrb[35].mxu1 }
0x14c5   :  { %v2445_v40 = vpop.eup %2444  ;;  %v1974_v49 = vmul.f32 -1.442695, %v1504_v44 }
0x14c6   :  { %v1575_v43 = vadd.f32 1.0, %v2445_v40 }
0x14c7   :  { %2446 = vpow2.f32 %v1974_v49 }
0x14c8   :  { %2448 = vrcp.f32 %v1575_v43  ;;  %v1768_v35 = vpop.f32.mrb[36].mxu1 }
0x14c9   :  { %v2279_v36 = vpop.f32.mrb[37].mxu1  ;;  %v1769_v41 = vadd.f32 %v1768_v35, %v1725_v61 }
0x14ca   :  { %v1771_v39 = vpop.f32.mrb[38].mxu1 }
0x14cb   :  { %v2280_v54 = vpop.f32.mrb[39].mxu1  ;;  %v1774_v38 = vmax.f32 %v1769_v41, 0.0 }
0x14cd   :  { %v1775_v48 = vpack.c.bf16 %v1774_v38, %v1774_v38 }
0x14d1   :  { %v2447_v22 = vpop.eup %2446 }
0x14d2   :  { %v2449_v42 = vpop.eup %2448  ;;  %v1508_v50 = vadd.f32 1.0, %v2447_v22 }
0x14d3   :  { %v1578_v51 = vmul.f32 %v2449_v42, %v2607_v34 }
0x14d4   :  { %2450 = vrcp.f32 %v1508_v50 }
0x14d5   :  { %v1579_v5 = vadd.f32 %v1578_v51, %v2613_v45 }
0x14d7   :  { %1582 = vrot.lane.b32.xlu0 %v1579_v5, %s2468_s4  ;;  %v1580_v58 = vmul.f32 %v1579_v5, %v2912_v16 }
0x14de   :  { %v2451_v46 = vpop.eup %2450 }
0x14df   :  { %v1511_v52 = vmul.f32 %v2451_v46, %v2607_v34 }
0x14e1   :  { %v1512_v55 = vadd.f32 %v1511_v52, %v2613_v45 }
0x14e3   :  { %1515 = vrot.lane.b32.xlu1 %v1512_v55, %s2468_s4  ;;  %v1513_v62 = vmul.f32 %v1512_v55, %v2916_v21  ;;  %v2462_v21 = vld [vmem:[%s3023_s3 + $0x10] sm:$0xff]  }
0x1549   :  { %v1583_v47 = vpop.permute.xlu0 %1582 }
0x154a   :  { %v1585_v8 = vmul.f32 %v1583_v47, %v1579_v5  ;;  %v2365_v47 = vld [vmem:[%s3030_s9 + $0x10] sm:$0xff]  }
0x154c   :  { %1587 = vrot.lane.b32.xlu0 %v1585_v8, %s2469_s12 }
0x1555   :  { %v1516_v56 = vpop.permute.xlu1 %1515 }
0x1556   :  { %v1518_v57 = vmul.f32 %v1516_v56, %v1512_v55  ;;  %v16_v56 = vstv %s3031_s10 }
0x1557   :  { %17 = vst [vmem:[#allocation2] sm:$0x1] %v16_v56 }
0x1558   :  { %1520 = vrot.lane.b32.xlu1 %v1518_v57, %s2469_s12 }
0x15be   :  { %v1588_v17 = vpop.permute.xlu0 %1587 }
0x15bf   :  { %v1590_v60 = vadd.f32 %v1588_v17, %v1580_v58 }
0x15c1   :  { %2452 = vtanh.f32 %v1590_v60 }
0x15ca   :  { %v1521_v63 = vpop.permute.xlu1 %1520 }
0x15cb   :  { %v2453_v0 = vpop.eup %2452  ;;  %v2954_v1 = vadd.f32 %v1521_v63, %v1513_v62 }
0x15cc   :  { %1593 = vrot.lane.b32.xlu0 %v2453_v0, %s2468_s4  ;;  %v1983_v0 = vld [vmem:[#allocation2] ss:$0 sm:$0xff] }
0x15cd   :  { %2454 = vtanh.f32 %v2954_v1 }
0x15d7   :  { %v2455_v2 = vpop.eup %2454 }
0x15d8   :  { %1526 = vrot.lane.b32.xlu1 %v2455_v2, %s2468_s4 }
0x163e   :  { %v1594_v3 = vpop.permute.xlu0 %1593 }
0x163f   :  { %v1596_v26 = vmul.f32 %v1594_v3, %v1579_v5 }
0x1641   :  { %v1597_v6 = vpack.c.bf16 %v1596_v26, %v1596_v26 }
0x1643   :  { %1599 = vrot.lane.b32.xlu0 %v1597_v6, %s2469_s12 }
0x164a   :  { %v1527_v16 = vpop.permute.xlu1 %1526 }
0x164b   :  { %v1529_v18 = vmul.f32 %v1527_v16, %v1512_v55  ;;  %v1781_v55 = vrot.slane %v1718_v32, %v263_v7 }
0x164d   :  { %v1644_v20 = vpack.c.bf16 %v1529_v18, %v1529_v18 }
0x164f   :  { %1646 = vrot.lane.b32.xlu1 %v1644_v20, %s2469_s12 }
0x16b5   :  { %v1600_v30 = vpop.permute.xlu0 %1599 }
0x16b6   :  { %2264 = vmatmul.mubr.msk.bf16.vlgmr.msra.gmra.mrb[32].mxu0 %vm189_vm6, %v1600_v30 }
0x16b7   :  { %2268 = vmatpush3.bf16.msra.mxu0 %v2462_v21  ;;  %2271 = vmatprep.mubr.msk.bf16.mxu0 %vm2465_vm2, %v2464_v4 }
0x16b8   :  { %2269 = vmatprep.subr.bf16.mxu0 %v2464_v4 }
0x16bb   :  { %2270 = vmatpush3.bf16.msra.mxu0 %v2463_v24 }
0x16bc   :  { %2287 = vmatprep.subr.bf16.mxu0 %v2464_v4 }
0x16c1   :  { %v1647_v23 = vpop.permute.xlu1 %1646 }
0x16c2   :  { %2272 = vmatmul.mubr.msk.bf16.vlgmr.msra.gmra.mrb[32].mxu0 %vm189_vm6, %v1647_v23 }
0x16c3   :  { %2293 = vmatprep.mubr.msk.bf16.mxu0 %vm2465_vm2, %v2464_v4 }
0x1795   :  { %v1685_v25 = vpop.f32.mrb[32].mxu0 }
0x1796   :  { %v2306_v27 = vadd.f32 %v1685_v25, %v2675_v9  ;;  %v2273_v28 = vpop.f32.mrb[33].mxu0  ;;  %v2362_v9 = vld [vmem:[%s3029_s7] sm:$0xff]  }
0x1797   :  { %v1688_v29 = vpop.f32.mrb[34].mxu0  ;;  %2282 = vmatpush3.bf16.msra.mxu1 %v2362_v9 }
0x1798   :  { %v1692_v31 = vmul.f32 %v2306_v27, %v2607_v34  ;;  %v2274_v13 = vpop.f32.mrb[35].mxu0 }
0x179a   :  { %v1979_v59 = vmul.f32 -1.442695, %v1692_v31  ;;  %2284 = vmatmul.mubr.msk.bf16.vlgmr.msra.gmra.mrb[40].mxu1 %vm1788_vm9, %v1775_v48 }
0x179c   :  { %2456 = vpow2.f32 %v1979_v59 }
0x17a6   :  { %v2457_v53 = vpop.eup %2456 }
0x17a7   :  { %v1696_v33 = vadd.f32 1.0, %v2457_v53 }
0x17a9   :  { %2458 = vrcp.f32 %v1696_v33 }
0x17b3   :  { %v2459_v37 = vpop.eup %2458 }
0x17b4   :  { %v1699_v44 = vmul.f32 %v2459_v37, %v2607_v34  ;;  %v2363_v34 = vld [vmem:[%s3030_s9] sm:$0xff]  }
0x17b5   :  { %2288 = vmatpush3.bf16.msra.mxu0 %v2363_v34 }
0x17b6   :  { %v1700_v40 = vadd.f32 %v1699_v44, %v2613_v45  ;;  %v2364_v45 = vld [vmem:[%s3030_s9 + $0x8] sm:$0xff]   ;;  %2289 = vmatprep.subr.bf16.mxu0 %v2464_v4 }
0x17b8   :  { %1703 = vrot.lane.b32.xlu0 %v1700_v40, %s2468_s4  ;;  %v1701_v51 = vmul.f32 %v1700_v40, %v2954_v1 }
0x17b9   :  { %2290 = vmatpush3.bf16.msra.mxu0 %v2364_v45 }
0x17ba   :  { %2291 = vmatprep.subr.bf16.mxu0 %v2464_v4 }
0x17bd   :  { %2292 = vmatpush3.bf16.msra.mxu0 %v2365_v47 }
0x182a   :  { %v1704_v49 = vpop.permute.xlu0 %1703 }
0x182b   :  { %v1706_v43 = vmul.f32 %v1704_v49, %v1700_v40 }
0x182d   :  { %1708 = vrot.lane.b32.xlu1 %v1706_v43, %s2469_s12 }
0x186d   :  { %v1826_v12 = vpop.f32.mrb[40].mxu1 }
0x186e   :  { %v2285_v22 = vpop.f32.mrb[41].mxu1  ;;  %v1827_v8 = vadd.f32 %v1826_v12, %v1781_v55 }
0x186f   :  { %v1829_v42 = vpop.f32.mrb[42].mxu1 }
0x1870   :  { %v2286_v50 = vpop.f32.mrb[43].mxu1  ;;  %v1832_v57 = vmax.f32 %v1827_v8, 0.0 }
0x189f   :  { %v1709_v5 = vpop.permute.xlu1 %1708 }
0x18a0   :  { %v1711_v46 = vadd.f32 %v1709_v5, %v1701_v51 }
0x18a2   :  { %2460 = vtanh.f32 %v1711_v46 }
0x18ac   :  { %v2461_v52 = vpop.eup %2460 }
0x18ad   :  { %1714 = vrot.lane.b32.xlu0 %v2461_v52, %s2468_s4 }
0x191f   :  { %v1715_v58 = vpop.permute.xlu0 %1714 }
0x1920   :  { %v1717_v17 = vmul.f32 %v1715_v58, %v1700_v40 }
0x1922   :  { %v2347_v4 = vpack.i.bf16 %v1832_v57, %v1717_v17 }
0x1924   :  { %2348 = vrot.lane.b32.xlu1 %v2347_v4, %s2469_s12 }
0x1996   :  { %v2349_v60 = vpop.permute.xlu1 %2348 }
0x1997   :  { %v2351_v11 = vunpack.i.h.bf16 %v2349_v60  ;;  %v2350_v7 = vunpack.i.l.bf16 %v2349_v60 }
0x1999   :  { %v1841_v62 = vsel %vm189_vm6, %v2350_v7, %v2351_v11 }
0x199a   :  { %v1842_v63 = vpack.c.bf16 %v1841_v62, %v1841_v62 }
0x199c   :  { %2294 = vmatmul.mubr.msk.bf16.vlgmr.msra.gmra.mrb[36].mxu0 %vm1874_vm10, %v1842_v63 }
0x1a6f   :  { %v1912_v1 = vpop.f32.mrb[36].mxu0 }
0x1a70   :  { %v1913_v2 = vadd.f32 %v1983_v0, %v1912_v1  ;;  %v2295_v3 = vpop.f32.mrb[37].mxu0 }
0x1a71   :  { %v1915_v26 = vpop.f32.mrb[38].mxu0 }
0x1a72   :  { %1919 = vst.msk [vmem:[%s3032_s11] sm:$0xff] %vm1918_vm11, %v1913_v2  ;;  %v2296_v6 = vpop.f32.mrb[39].mxu0 }

</bundles_post_ra>
